<compile_context>
chip_gen: v7x
topology: tpu7x:2x2x1
jax: 0.10.0
libtpu: 0.0.40
codegen_flags: <defaults>
</compile_context>

<pallas_src>
import functools
import math

import jax
import jax.numpy as jnp
from jax import lax
from jax.experimental import pallas as pl
from jax.experimental.pallas import tpu as pltpu


# ----------------------------------------------------------------------------
# Tiling helpers
# ----------------------------------------------------------------------------
def _round_up(x, m):
    return ((x + m - 1) // m) * m


def _choose_tile(dim, unit, max_tile):
    """Return (tile, padded_dim).  tile is a multiple of `unit`, <= max_tile,
    and divides padded_dim.  Prefers zero extra padding when a reasonable
    divisor exists; otherwise pads up to a multiple of max_tile."""
    padded = _round_up(max(dim, 1), unit)
    if padded <= max_tile:
        return padded, padded
    best = unit
    t = unit
    while t <= max_tile:
        if padded % t == 0:
            best = t
        t += unit
    if best >= max_tile // 2:
        return best, padded
    return max_tile, _round_up(dim, max_tile)


# ----------------------------------------------------------------------------
# Pallas kernels
# ----------------------------------------------------------------------------
def _matmul_kernel(a_ref, b_ref, bias_ref, o_ref, acc_ref, *, activation):
    """Tiled C = act(A @ B + bias). Grid = (Mp//tm, Np//tn, Kp//tk)."""
    @pl.when(pl.program_id(2) == 0)
    def _():
        acc_ref[...] = jnp.zeros_like(acc_ref)

    acc_ref[...] += jnp.dot(a_ref[...], b_ref[...],
                            preferred_element_type=jnp.float32)

    @pl.when(pl.program_id(2) == pl.num_programs(2) - 1)
    def _():
        out = acc_ref[...] + bias_ref[...]
        if activation == "relu":
            out = jnp.maximum(out, 0.0)
        o_ref[...] = out.astype(o_ref.dtype)


def _ln_math(x, g, b):
    mean = jnp.mean(x, axis=-1, keepdims=True)
    var = jnp.mean(jnp.square(x - mean), axis=-1, keepdims=True)
    inv = lax.rsqrt(var + 1e-5)                      # PyTorch default eps
    return (x - mean) * inv * g + b


def _layernorm_kernel(x_ref, g_ref, b_ref, o_ref):
    x = x_ref[...].astype(jnp.float32)
    o_ref[...] = _ln_math(x, g_ref[...], b_ref[...]).astype(o_ref.dtype)


def _add_layernorm_kernel(x_ref, r_ref, g_ref, b_ref, o_ref):
    """Fused residual-add + LayerNorm (one HBM round-trip instead of two)."""
    x = x_ref[...].astype(jnp.float32) + r_ref[...].astype(jnp.float32)
    o_ref[...] = _ln_math(x, g_ref[...], b_ref[...]).astype(o_ref.dtype)


def _attention_kernel(q_ref, k_ref, v_ref, o_ref, *, scale):
    """softmax(Q K^T * scale) V for a block of (batch*head) slices at once."""
    q = q_ref[...]                                   # (hb, Lq, Dh) bf16
    k = k_ref[...]                                   # (hb, Lk, Dh) bf16
    v = v_ref[...]                                   # (hb, Lk, Dh) bf16
    s = jnp.einsum("bqd,bkd->bqk", q, k,
                   preferred_element_type=jnp.float32) * scale
    m = jnp.max(s, axis=-1, keepdims=True)
    p = jnp.exp(s - m)
    denom = jnp.sum(p, axis=-1, keepdims=True)
    p = p * pl.reciprocal(denom, approx=True)
    o_ref[...] = jnp.einsum("bqk,bkd->bqd", p.astype(v.dtype), v,
                            preferred_element_type=jnp.float32
                            ).astype(o_ref.dtype)


# ----------------------------------------------------------------------------
# Pallas wrappers
# ----------------------------------------------------------------------------
def matmul_pallas(a, b, bias, activation=None):
    """act(a @ b + bias): a (M,K), b (K,N), bias (N,) -> (M,N) f32.
    Operands go to the MXU in bf16, accumulation in f32."""
    M, K = a.shape
    Kb, N = b.shape
    assert K == Kb

    tm, Mp = _choose_tile(M, 8, 256)
    tn, Np = _choose_tile(N, 128, 512)
    tk, Kp = _choose_tile(K, 128, 512)

    a_p = a.astype(jnp.bfloat16)
    if (Mp, Kp) != (M, K):
        a_p = jnp.pad(a_p, ((0, Mp - M), (0, Kp - K)))
    b_p = b.astype(jnp.bfloat16)
    if (Kp, Np) != (K, N):
        b_p = jnp.pad(b_p, ((0, Kp - K), (0, Np - N)))
    bias_p = bias.astype(jnp.float32).reshape(1, N)
    if Np != N:
        bias_p = jnp.pad(bias_p, ((0, 0), (0, Np - N)))

    grid = (Mp // tm, Np // tn, Kp // tk)

    # VMEM footprint: double-buffered A/B/bias/out blocks + f32 accumulator.
    vmem_bytes = (2 * (tm * tk * 2 + tk * tn * 2 + tn * 4 + tm * tn * 4)
                  + tm * tn * 4)
    vmem_limit = int(min(max(2 * vmem_bytes, 32 << 20), 48 << 20))

    kernel = functools.partial(_matmul_kernel, activation=activation)
    out = pl.pallas_call(
        kernel,
        out_shape=jax.ShapeDtypeStruct((Mp, Np), jnp.float32),
        grid_spec=pltpu.PrefetchScalarGridSpec(
            num_scalar_prefetch=0,
            grid=grid,
            in_specs=[
                pl.BlockSpec((tm, tk), lambda i, j, k: (i, k)),
                pl.BlockSpec((tk, tn), lambda i, j, k: (k, j)),
                pl.BlockSpec((1, tn), lambda i, j, k: (0, j)),
            ],
            out_specs=pl.BlockSpec((tm, tn), lambda i, j, k: (i, j)),
            scratch_shapes=[pltpu.VMEM((tm, tn), jnp.float32)],
        ),
        compiler_params=pltpu.CompilerParams(
            dimension_semantics=("parallel", "parallel", "arbitrary"),
            vmem_limit_bytes=vmem_limit),
    )(a_p, b_p, bias_p)
    if (Mp, Np) != (M, N):
        out = out[:M, :N]
    return out


def _layernorm_call(x2d, gamma, beta, residual2d=None):
    M, E = x2d.shape
    tm, Mp = _choose_tile(M, 8, 512)

    def padrows(z):
        return jnp.pad(z, ((0, Mp - M), (0, 0))) if Mp != M else z

    args = [padrows(x2d)]
    in_specs = [pl.BlockSpec((tm, E), lambda i: (i, 0))]
    if residual2d is not None:
        args.append(padrows(residual2d))
        in_specs.append(pl.BlockSpec((tm, E), lambda i: (i, 0)))
        kernel = _add_layernorm_kernel
    else:
        kernel = _layernorm_kernel
    args += [gamma.astype(jnp.float32).reshape(1, E),
             beta.astype(jnp.float32).reshape(1, E)]
    in_specs += [pl.BlockSpec((1, E), lambda i: (0, 0)),
                 pl.BlockSpec((1, E), lambda i: (0, 0))]

    out = pl.pallas_call(
        kernel,
        out_shape=jax.ShapeDtypeStruct((Mp, E), jnp.float32),
        grid_spec=pltpu.PrefetchScalarGridSpec(
            num_scalar_prefetch=0,
            grid=(Mp // tm,),
            in_specs=in_specs,
            out_specs=pl.BlockSpec((tm, E), lambda i: (i, 0)),
        ),
        compiler_params=pltpu.CompilerParams(dimension_semantics=("parallel",)),
    )(*args)
    return out[:M] if Mp != M else out


def _head_block(NH):
    for hb in (8, 16, 4, 2, 1):
        if NH % hb == 0:
            return hb
    return NH


def attention_pallas(q, k, v):
    """q/k/v: (NH, L, Dh) -> (NH, Lq, Dh) f32, batched over heads."""
    NH, Lq, Dh = q.shape
    Lk = k.shape[1]
    scale = 1.0 / math.sqrt(Dh)
    hb = _head_block(NH)
    q = q.astype(jnp.bfloat16)
    k = k.astype(jnp.bfloat16)
    v = v.astype(jnp.bfloat16)
    kernel = functools.partial(_attention_kernel, scale=scale)
    return pl.pallas_call(
        kernel,
        out_shape=jax.ShapeDtypeStruct((NH, Lq, Dh), jnp.float32),
        grid_spec=pltpu.PrefetchScalarGridSpec(
            num_scalar_prefetch=0,
            grid=(NH // hb,),
            in_specs=[
                pl.BlockSpec((hb, Lq, Dh), lambda i: (i, 0, 0)),
                pl.BlockSpec((hb, Lk, Dh), lambda i: (i, 0, 0)),
                pl.BlockSpec((hb, Lk, Dh), lambda i: (i, 0, 0)),
            ],
            out_specs=pl.BlockSpec((hb, Lq, Dh), lambda i: (i, 0, 0)),
        ),
        compiler_params=pltpu.CompilerParams(dimension_semantics=("parallel",)),
    )(q, k, v)


# ----------------------------------------------------------------------------
# Model glue (reshape / parameter plumbing in plain JAX)
# ----------------------------------------------------------------------------
def linear(x, w, b, activation=None):
    """y = x @ w + b, w stored as (in, out) (== PyTorch Linear weight.T)."""
    *lead, K = x.shape
    N = w.shape[1]
    M = 1
    for d in lead:
        M *= d
    out = matmul_pallas(x.reshape(M, K), w, b, activation)
    return out.reshape(*lead, N)


def layer_norm(x, gamma, beta):
    shape = x.shape
    return _layernorm_call(x.reshape(-1, shape[-1]), gamma, beta).reshape(shape)


def add_layer_norm(x, r, gamma, beta):
    shape = x.shape
    return _layernorm_call(x.reshape(-1, shape[-1]), gamma, beta,
                           residual2d=r.reshape(-1, shape[-1])).reshape(shape)


def _split_heads(x, n_head):
    # (L, Nb, E) -> (Nb*H, L, Dh)
    L, Nb, E = x.shape
    Dh = E // n_head
    return x.reshape(L, Nb, n_head, Dh).transpose(1, 2, 0, 3).reshape(
        Nb * n_head, L, Dh)


def _merge_heads(x, Lq, Nb, n_head):
    # (Nb*H, Lq, Dh) -> (Lq, Nb, E)
    Dh = x.shape[-1]
    return x.reshape(Nb, n_head, Lq, Dh).transpose(2, 0, 1, 3).reshape(
        Lq, Nb, n_head * Dh)


def mha_self(x, p, n_head):
    """Self-attention with fused QKV projection.  x: (Lq, Nb, E)."""
    Lq, Nb, E = x.shape
    qkv = linear(x, p["w_qkv"], p["b_qkv"])              # (Lq, Nb, 3E)
    q, k, v = jnp.split(qkv, 3, axis=-1)
    oh = attention_pallas(_split_heads(q, n_head),
                          _split_heads(k, n_head),
                          _split_heads(v, n_head))       # (Nb*H, Lq, Dh)
    o = _merge_heads(oh, Lq, Nb, n_head)
    return linear(o, p["w_o"], p["b_o"])


def mha_cross(x, mem, p, n_head):
    """Cross-attention: Q from x, fused K/V projection from mem."""
    Lq, Nb, E = x.shape
    q = linear(x, p["w_q"], p["b_q"])
    kv = linear(mem, p["w_kv"], p["b_kv"])               # (Lk, Nb, 2E)
    k, v = jnp.split(kv, 2, axis=-1)
    oh = attention_pallas(_split_heads(q, n_head),
                          _split_heads(k, n_head),
                          _split_heads(v, n_head))
    o = _merge_heads(oh, Lq, Nb, n_head)
    return linear(o, p["w_o"], p["b_o"])


def encoder_layer(x, p, n_head):
    a = mha_self(x, p["self_attn"], n_head)
    x = add_layer_norm(x, a, p["ln1_g"], p["ln1_b"])
    f = linear(linear(x, p["w1"], p["b1"], activation="relu"), p["w2"], p["b2"])
    x = add_layer_norm(x, f, p["ln2_g"], p["ln2_b"])
    return x


def decoder_layer(x, mem, p, n_head):
    a = mha_self(x, p["self_attn"], n_head)
    x = add_layer_norm(x, a, p["ln1_g"], p["ln1_b"])
    c = mha_cross(x, mem, p["cross_attn"], n_head)
    x = add_layer_norm(x, c, p["ln2_g"], p["ln2_b"])
    f = linear(linear(x, p["w1"], p["b1"], activation="relu"), p["w2"], p["b2"])
    x = add_layer_norm(x, f, p["ln3_g"], p["ln3_b"])
    return x


def model_forward(params, src, tgt, *, n_head):
    # Embedding lookup + positional add (plain XLA glue).
    src_emb = params["embedding"][src] + params["pos"][: src.shape[1], :]
    tgt_emb = params["embedding"][tgt] + params["pos"][: tgt.shape[1], :]

    # Encoder stack + final encoder LayerNorm (nn.Transformer default).
    mem = src_emb
    for lp in params["enc_layers"]:
        mem = encoder_layer(mem, lp, n_head)
    mem = layer_norm(mem, params["enc_norm_g"], params["enc_norm_b"])

    # Decoder stack + final decoder LayerNorm.
    # TODO(synk): no causal tgt_mask, matching the reference forward() which
    #             calls nn.Transformer without masks.
    out = tgt_emb
    for lp in params["dec_layers"]:
        out = decoder_layer(out, mem, lp, n_head)
    out = layer_norm(out, params["dec_norm_g"], params["dec_norm_b"])

    # Output projection to vocab.
    return linear(out, params["out_w"], params["out_b"])


# ----------------------------------------------------------------------------
# Deterministic parameter initialization (shapes mirror the nn.Module __init__)
# Linear weights are stored in bf16 (MXU-native); biases/LN params in f32.
# ----------------------------------------------------------------------------
def init_params(key, *, n_vocab, n_embed, n_head, dim_feedforward, max_seq_len,
                n_enc, n_dec):
    keys = iter(jax.random.split(key, 1024))

    def nrm(shape, scale=0.02, dtype=jnp.bfloat16):
        return (jax.random.normal(next(keys), shape, jnp.float32)
                * scale).astype(dtype)

    def self_attn_params():
        return {
            "w_qkv": nrm((n_embed, 3 * n_embed)),
            "b_qkv": jnp.zeros((3 * n_embed,), jnp.float32),
            "w_o": nrm((n_embed, n_embed)),
            "b_o": jnp.zeros((n_embed,), jnp.float32),
        }

    def cross_attn_params():
        return {
            "w_q": nrm((n_embed, n_embed)),
            "b_q": jnp.zeros((n_embed,), jnp.float32),
            "w_kv": nrm((n_embed, 2 * n_embed)),
            "b_kv": jnp.zeros((2 * n_embed,), jnp.float32),
            "w_o": nrm((n_embed, n_embed)),
            "b_o": jnp.zeros((n_embed,), jnp.float32),
        }

    def ffn_and_norms(n_norms):
        d = {
            "w1": nrm((n_embed, dim_feedforward)),
            "b1": jnp.zeros((dim_feedforward,), jnp.float32),
            "w2": nrm((dim_feedforward, n_embed)),
            "b2": jnp.zeros((n_embed,), jnp.float32),
        }
        for i in range(1, n_norms + 1):
            d[f"ln{i}_g"] = jnp.ones((n_embed,), jnp.float32)
            d[f"ln{i}_b"] = jnp.zeros((n_embed,), jnp.float32)
        return d

    enc_layers = []
    for _ in range(n_enc):
        lp = {"self_attn": self_attn_params()}
        lp.update(ffn_and_norms(2))
        enc_layers.append(lp)

    dec_layers = []
    for _ in range(n_dec):
        lp = {"self_attn": self_attn_params(),
              "cross_attn": cross_attn_params()}
        lp.update(ffn_and_norms(3))
        dec_layers.append(lp)

    return {
        "embedding": nrm((n_vocab, n_embed), scale=1.0, dtype=jnp.float32),
        "pos": jax.random.uniform(next(keys), (max_seq_len, n_embed),
                                  jnp.float32),
        "enc_layers": enc_layers,
        "dec_layers": dec_layers,
        "enc_norm_g": jnp.ones((n_embed,), jnp.float32),
        "enc_norm_b": jnp.zeros((n_embed,), jnp.float32),
        "dec_norm_g": jnp.ones((n_embed,), jnp.float32),
        "dec_norm_b": jnp.zeros((n_embed,), jnp.float32),
        "out_w": nrm((n_embed, n_vocab)),
        "out_b": jnp.zeros((n_vocab,), jnp.float32),
    }


# ----------------------------------------------------------------------------
if __name__ == "__main__":
    # Small config consistent with the module (defaults n_vocab=50257, n_embed=768,
    # n_head=8, 6+6 layers, dim_feedforward=2048 scaled down for a quick demo).
    cfg = dict(n_vocab=256, n_embed=128, n_head=4, dim_feedforward=256,
               max_seq_len=8, n_enc=2, n_dec=2)
    B, S = 8, 4   # src/tgt token shape (B, S); S <= max_seq_len

    key = jax.random.PRNGKey(0)
    pkey, skey, tkey = jax.random.split(key, 3)
    params = init_params(pkey, **cfg)

    src = jax.random.randint(skey, (B, S), 0, cfg["n_vocab"], dtype=jnp.int32)
    tgt = jax.random.randint(tkey, (B, S), 0, cfg["n_vocab"], dtype=jnp.int32)

    fwd = jax.jit(functools.partial(model_forward, n_head=cfg["n_head"]))
    logits = fwd(params, src, tgt)
    jax.block_until_ready(logits)

    assert logits.shape == (B, S, cfg["n_vocab"]), logits.shape
    assert bool(jnp.all(jnp.isfinite(logits)))
    print("KERNEL_OK")
</pallas_src>

<mosaic_0001>
module attributes {stable_mosaic.version = 11 : i64} {
  func.func @_matmul_kernel(%arg0: i32, %arg1: i32, %arg2: i32, %arg3: memref<32x128xbf16, #tpu.memory_space<vmem>>, %arg4: memref<128x384xbf16, #tpu.memory_space<vmem>>, %arg5: memref<1x384xf32, #tpu.memory_space<vmem>>, %arg6: memref<32x384xf32, #tpu.memory_space<vmem>>, %arg7: memref<32x384xf32, #tpu.memory_space<vmem>>) attributes {dimension_semantics = [#tpu.dimension_semantics<parallel>, #tpu.dimension_semantics<parallel>, #tpu.dimension_semantics<arbitrary>], iteration_bounds = array<i64: 1, 1, 1>, scalar_prefetch = 0 : i64, scratch_operands = 1 : i64, tpu.core_type = #tpu.core_type<tc>, window_params = [{transform_indices = @transform_0, window_bounds = array<i64: 32, 128>}, {transform_indices = @transform_1, window_bounds = array<i64: 128, 384>}, {transform_indices = @transform_2, window_bounds = array<i64: 1, 384>}, {transform_indices = @transform_3, window_bounds = array<i64: 32, 384>}]} {
    %c0_i32 = arith.constant 0 : i32
    %0 = arith.cmpi eq, %arg2, %c0_i32 : i32
    %1 = arith.extui %0 : i1 to i32
    %c0_i32_0 = arith.constant 0 : i32
    %2 = arith.cmpi ne, %1, %c0_i32_0 : i32
    scf.if %2 {
      %cst_10 = arith.constant 0.000000e+00 : f32
      %12 = vector.broadcast %cst_10 : f32 to vector<32x384xf32>
      %c0_11 = arith.constant 0 : index
      %c0_12 = arith.constant 0 : index
      %13 = vector.load %arg7[%c0_11, %c0_12] : memref<32x384xf32, #tpu.memory_space<vmem>>, vector<32x384xf32>
      tpu.vector_store %arg7[%c0_11, %c0_12], %12 {strides = array<i32>} : memref<32x384xf32, #tpu.memory_space<vmem>>, vector<32x384xf32>,
    } else {
    }
    %c0 = arith.constant 0 : index
    %c0_1 = arith.constant 0 : index
    %3 = vector.load %arg7[%c0, %c0_1] : memref<32x384xf32, #tpu.memory_space<vmem>>, vector<32x384xf32>
    %c0_2 = arith.constant 0 : index
    %c0_3 = arith.constant 0 : index
    %4 = vector.load %arg3[%c0_2, %c0_3] : memref<32x128xbf16, #tpu.memory_space<vmem>>, vector<32x128xbf16>
    %c0_4 = arith.constant 0 : index
    %c0_5 = arith.constant 0 : index
    %5 = vector.load %arg4[%c0_4, %c0_5] : memref<128x384xbf16, #tpu.memory_space<vmem>>, vector<128x384xbf16>
    %cst = arith.constant dense<0.000000e+00> : vector<32x384xf32>
    %6 = tpu.matmul %4, %5, %cst {dimension_numbers = #tpu.dot_dimension_numbers<[1], [0], [0], [1], [0, 0, 1, 1], [], []>} : vector<32x128xbf16>, vector<128x384xbf16>, vector<32x384xf32> -> vector<32x384xf32>
    %7 = arith.addf %3, %6 : vector<32x384xf32>
    %c0_6 = arith.constant 0 : index
    %c0_7 = arith.constant 0 : index
    %8 = vector.load %arg7[%c0_6, %c0_7] : memref<32x384xf32, #tpu.memory_space<vmem>>, vector<32x384xf32>
    tpu.vector_store %arg7[%c0_6, %c0_7], %7 {strides = array<i32>} : memref<32x384xf32, #tpu.memory_space<vmem>>, vector<32x384xf32>,
    %c0_i32_8 = arith.constant 0 : i32
    %9 = arith.cmpi eq, %arg2, %c0_i32_8 : i32
    %10 = arith.extui %9 : i1 to i32
    %c0_i32_9 = arith.constant 0 : i32
    %11 = arith.cmpi ne, %10, %c0_i32_9 : i32
    scf.if %11 {
      %c0_10 = arith.constant 0 : index
      %c0_11 = arith.constant 0 : index
      %12 = vector.load %arg7[%c0_10, %c0_11] : memref<32x384xf32, #tpu.memory_space<vmem>>, vector<32x384xf32>
      %c0_12 = arith.constant 0 : index
      %c0_13 = arith.constant 0 : index
      %13 = vector.load %arg5[%c0_12, %c0_13] : memref<1x384xf32, #tpu.memory_space<vmem>>, vector<1x384xf32>
      %14 = vector.broadcast %13 : vector<1x384xf32> to vector<32x384xf32>
      %15 = arith.addf %12, %14 : vector<32x384xf32>
      %c0_14 = arith.constant 0 : index
      %c0_15 = arith.constant 0 : index
      %16 = vector.load %arg6[%c0_14, %c0_15] : memref<32x384xf32, #tpu.memory_space<vmem>>, vector<32x384xf32>
      tpu.vector_store %arg6[%c0_14, %c0_15], %15 {strides = array<i32>} : memref<32x384xf32, #tpu.memory_space<vmem>>, vector<32x384xf32>,
    } else {
    }
    return
  }
  func.func @transform_0(%arg0: i32, %arg1: i32, %arg2: i32) -> (i32, i32) {
    %c0_i32 = arith.constant 0 : i32
    return %arg0, %arg2 : i32, i32
  }
  func.func @transform_1(%arg0: i32, %arg1: i32, %arg2: i32) -> (i32, i32) {
    %c0_i32 = arith.constant 0 : i32
    return %arg2, %arg1 : i32, i32
  }
  func.func @transform_2(%arg0: i32, %arg1: i32, %arg2: i32) -> (i32, i32) {
    %c0_i32 = arith.constant 0 : i32
    %c0_i32_0 = arith.constant 0 : i32
    return %c0_i32, %arg1 : i32, i32
  }
  func.func @transform_3(%arg0: i32, %arg1: i32, %arg2: i32) -> (i32, i32) {
    %c0_i32 = arith.constant 0 : i32
    return %arg0, %arg1 : i32, i32
  }
}

module attributes {stable_mosaic.version = 11 : i64} {
  func.func @_attention_kernel(%arg0: i32, %arg1: memref<8x8x32xbf16, #tpu.memory_space<vmem>>, %arg2: memref<8x8x32xbf16, #tpu.memory_space<vmem>>, %arg3: memref<8x8x32xbf16, #tpu.memory_space<vmem>>, %arg4: memref<8x8x32xf32, #tpu.memory_space<vmem>>) attributes {dimension_semantics = [#tpu.dimension_semantics<parallel>], iteration_bounds = array<i64: 2>, scalar_prefetch = 0 : i64, scratch_operands = 0 : i64, tpu.core_type = #tpu.core_type<tc>, window_params = [{transform_indices = @transform_0, window_bounds = array<i64: 8, 8, 32>}, {transform_indices = @transform_1, window_bounds = array<i64: 8, 8, 32>}, {transform_indices = @transform_2, window_bounds = array<i64: 8, 8, 32>}, {transform_indices = @transform_3, window_bounds = array<i64: 8, 8, 32>}]} {
    %c0 = arith.constant 0 : index
    %c0_0 = arith.constant 0 : index
    %c0_1 = arith.constant 0 : index
    %0 = vector.load %arg1[%c0, %c0_0, %c0_1] : memref<8x8x32xbf16, #tpu.memory_space<vmem>>, vector<8x8x32xbf16>
    %c0_2 = arith.constant 0 : index
    %c0_3 = arith.constant 0 : index
    %c0_4 = arith.constant 0 : index
    %1 = vector.load %arg2[%c0_2, %c0_3, %c0_4] : memref<8x8x32xbf16, #tpu.memory_space<vmem>>, vector<8x8x32xbf16>
    %c0_5 = arith.constant 0 : index
    %c0_6 = arith.constant 0 : index
    %c0_7 = arith.constant 0 : index
    %2 = vector.load %arg3[%c0_5, %c0_6, %c0_7] : memref<8x8x32xbf16, #tpu.memory_space<vmem>>, vector<8x8x32xbf16>
    "tpu.trace_start"() <{level = 10 : i32, message = "bqd,bkd->bqk"}> : () -> ()
    %cst = arith.constant dense<0.000000e+00> : vector<8x8x8xf32>
    %3 = tpu.matmul %0, %1, %cst {dimension_numbers = #tpu.dot_dimension_numbers<[2], [2], [1], [1], [0, 0, 0, 1, 1, 1], [0], [0]>} : vector<8x8x32xbf16>, vector<8x8x32xbf16>, vector<8x8x8xf32> -> vector<8x8x8xf32>
    "tpu.trace_stop"() : () -> ()
    %cst_8 = arith.constant 0.176776692 : f32
    %4 = vector.broadcast %cst_8 : f32 to vector<8x8x8xf32>
    %5 = arith.mulf %3, %4 : vector<8x8x8xf32>
    %cst_9 = arith.constant dense<0xFF800000> : vector<8x8xf32>
    %6 = vector.multi_reduction <maximumf>, %5, %cst_9 [2] : vector<8x8x8xf32> to vector<8x8xf32>
    %7 = vector.shape_cast %6 : vector<8x8xf32> to vector<8x8x1xf32>
    %8 = vector.broadcast %7 : vector<8x8x1xf32> to vector<8x8x8xf32>
    %9 = arith.subf %5, %8 : vector<8x8x8xf32>
    %10 = math.exp %9 : vector<8x8x8xf32>
    %cst_10 = arith.constant dense<0.000000e+00> : vector<8x8xf32>
    %11 = vector.multi_reduction <add>, %10, %cst_10 [2] : vector<8x8x8xf32> to vector<8x8xf32>
    %12 = vector.shape_cast %11 : vector<8x8xf32> to vector<8x8x1xf32>
    %13 = tpu.reciprocal %12 {approx = true} : vector<8x8x1xf32> -> vector<8x8x1xf32>
    %14 = vector.broadcast %13 : vector<8x8x1xf32> to vector<8x8x8xf32>
    %15 = arith.mulf %10, %14 : vector<8x8x8xf32>
    %16 = arith.truncf %15 : vector<8x8x8xf32> to vector<8x8x8xbf16>
    "tpu.trace_start"() <{level = 10 : i32, message = "bqk,bkd->bqd"}> : () -> ()
    %cst_11 = arith.constant dense<0.000000e+00> : vector<8x8x32xf32>
    %17 = tpu.matmul %16, %2, %cst_11 {dimension_numbers = #tpu.dot_dimension_numbers<[2], [1], [1], [2], [0, 0, 0, 1, 1, 2], [0], [0]>} : vector<8x8x8xbf16>, vector<8x8x32xbf16>, vector<8x8x32xf32> -> vector<8x8x32xf32>
    "tpu.trace_stop"() : () -> ()
    %c0_12 = arith.constant 0 : index
    %c0_13 = arith.constant 0 : index
    %c0_14 = arith.constant 0 : index
    %18 = vector.load %arg4[%c0_12, %c0_13, %c0_14] : memref<8x8x32xf32, #tpu.memory_space<vmem>>, vector<8x8x32xf32>
    tpu.vector_store %arg4[%c0_12, %c0_13, %c0_14], %17 {strides = array<i32>} : memref<8x8x32xf32, #tpu.memory_space<vmem>>, vector<8x8x32xf32>,
    return
  }
  func.func @transform_0(%arg0: i32) -> (i32, i32, i32) {
    %c0_i32 = arith.constant 0 : i32
    %c0_i32_0 = arith.constant 0 : i32
    %c0_i32_1 = arith.constant 0 : i32
    return %arg0, %c0_i32, %c0_i32_0 : i32, i32, i32
  }
  func.func @transform_1(%arg0: i32) -> (i32, i32, i32) {
    %c0_i32 = arith.constant 0 : i32
    %c0_i32_0 = arith.constant 0 : i32
    %c0_i32_1 = arith.constant 0 : i32
    return %arg0, %c0_i32, %c0_i32_0 : i32, i32, i32
  }
  func.func @transform_2(%arg0: i32) -> (i32, i32, i32) {
    %c0_i32 = arith.constant 0 : i32
    %c0_i32_0 = arith.constant 0 : i32
    %c0_i32_1 = arith.constant 0 : i32
    return %arg0, %c0_i32, %c0_i32_0 : i32, i32, i32
  }
  func.func @transform_3(%arg0: i32) -> (i32, i32, i32) {
    %c0_i32 = arith.constant 0 : i32
    %c0_i32_0 = arith.constant 0 : i32
    %c0_i32_1 = arith.constant 0 : i32
    return %arg0, %c0_i32, %c0_i32_0 : i32, i32, i32
  }
}

module attributes {stable_mosaic.version = 11 : i64} {
  func.func @_matmul_kernel(%arg0: i32, %arg1: i32, %arg2: i32, %arg3: memref<32x128xbf16, #tpu.memory_space<vmem>>, %arg4: memref<128x128xbf16, #tpu.memory_space<vmem>>, %arg5: memref<1x128xf32, #tpu.memory_space<vmem>>, %arg6: memref<32x128xf32, #tpu.memory_space<vmem>>, %arg7: memref<32x128xf32, #tpu.memory_space<vmem>>) attributes {dimension_semantics = [#tpu.dimension_semantics<parallel>, #tpu.dimension_semantics<parallel>, #tpu.dimension_semantics<arbitrary>], iteration_bounds = array<i64: 1, 1, 1>, scalar_prefetch = 0 : i64, scratch_operands = 1 : i64, tpu.core_type = #tpu.core_type<tc>, window_params = [{transform_indices = @transform_0, window_bounds = array<i64: 32, 128>}, {transform_indices = @transform_1, window_bounds = array<i64: 128, 128>}, {transform_indices = @transform_2, window_bounds = array<i64: 1, 128>}, {transform_indices = @transform_3, window_bounds = array<i64: 32, 128>}]} {
    %c0_i32 = arith.constant 0 : i32
    %0 = arith.cmpi eq, %arg2, %c0_i32 : i32
    %1 = arith.extui %0 : i1 to i32
    %c0_i32_0 = arith.constant 0 : i32
    %2 = arith.cmpi ne, %1, %c0_i32_0 : i32
    scf.if %2 {
      %cst_10 = arith.constant 0.000000e+00 : f32
      %12 = vector.broadcast %cst_10 : f32 to vector<32x128xf32>
      %c0_11 = arith.constant 0 : index
      %c0_12 = arith.constant 0 : index
      %13 = vector.load %arg7[%c0_11, %c0_12] : memref<32x128xf32, #tpu.memory_space<vmem>>, vector<32x128xf32>
      tpu.vector_store %arg7[%c0_11, %c0_12], %12 {strides = array<i32>} : memref<32x128xf32, #tpu.memory_space<vmem>>, vector<32x128xf32>,
    } else {
    }
    %c0 = arith.constant 0 : index
    %c0_1 = arith.constant 0 : index
    %3 = vector.load %arg7[%c0, %c0_1] : memref<32x128xf32, #tpu.memory_space<vmem>>, vector<32x128xf32>
    %c0_2 = arith.constant 0 : index
    %c0_3 = arith.constant 0 : index
    %4 = vector.load %arg3[%c0_2, %c0_3] : memref<32x128xbf16, #tpu.memory_space<vmem>>, vector<32x128xbf16>
    %c0_4 = arith.constant 0 : index
    %c0_5 = arith.constant 0 : index
    %5 = vector.load %arg4[%c0_4, %c0_5] : memref<128x128xbf16, #tpu.memory_space<vmem>>, vector<128x128xbf16>
    %cst = arith.constant dense<0.000000e+00> : vector<32x128xf32>
    %6 = tpu.matmul %4, %5, %cst {dimension_numbers = #tpu.dot_dimension_numbers<[1], [0], [0], [1], [0, 0, 1, 1], [], []>} : vector<32x128xbf16>, vector<128x128xbf16>, vector<32x128xf32> -> vector<32x128xf32>
    %7 = arith.addf %3, %6 : vector<32x128xf32>
    %c0_6 = arith.constant 0 : index
    %c0_7 = arith.constant 0 : index
    %8 = vector.load %arg7[%c0_6, %c0_7] : memref<32x128xf32, #tpu.memory_space<vmem>>, vector<32x128xf32>
    tpu.vector_store %arg7[%c0_6, %c0_7], %7 {strides = array<i32>} : memref<32x128xf32, #tpu.memory_space<vmem>>, vector<32x128xf32>,
    %c0_i32_8 = arith.constant 0 : i32
    %9 = arith.cmpi eq, %arg2, %c0_i32_8 : i32
    %10 = arith.extui %9 : i1 to i32
    %c0_i32_9 = arith.constant 0 : i32
    %11 = arith.cmpi ne, %10, %c0_i32_9 : i32
    scf.if %11 {
      %c0_10 = arith.constant 0 : index
      %c0_11 = arith.constant 0 : index
      %12 = vector.load %arg7[%c0_10, %c0_11] : memref<32x128xf32, #tpu.memory_space<vmem>>, vector<32x128xf32>
      %c0_12 = arith.constant 0 : index
      %c0_13 = arith.constant 0 : index
      %13 = vector.load %arg5[%c0_12, %c0_13] : memref<1x128xf32, #tpu.memory_space<vmem>>, vector<1x128xf32>
      %14 = vector.broadcast %13 : vector<1x128xf32> to vector<32x128xf32>
      %15 = arith.addf %12, %14 : vector<32x128xf32>
      %c0_14 = arith.constant 0 : index
      %c0_15 = arith.constant 0 : index
      %16 = vector.load %arg6[%c0_14, %c0_15] : memref<32x128xf32, #tpu.memory_space<vmem>>, vector<32x128xf32>
      tpu.vector_store %arg6[%c0_14, %c0_15], %15 {strides = array<i32>} : memref<32x128xf32, #tpu.memory_space<vmem>>, vector<32x128xf32>,
    } else {
    }
    return
  }
  func.func @transform_0(%arg0: i32, %arg1: i32, %arg2: i32) -> (i32, i32) {
    %c0_i32 = arith.constant 0 : i32
    return %arg0, %arg2 : i32, i32
  }
  func.func @transform_1(%arg0: i32, %arg1: i32, %arg2: i32) -> (i32, i32) {
    %c0_i32 = arith.constant 0 : i32
    return %arg2, %arg1 : i32, i32
  }
  func.func @transform_2(%arg0: i32, %arg1: i32, %arg2: i32) -> (i32, i32) {
    %c0_i32 = arith.constant 0 : i32
    %c0_i32_0 = arith.constant 0 : i32
    return %c0_i32, %arg1 : i32, i32
  }
  func.func @transform_3(%arg0: i32, %arg1: i32, %arg2: i32) -> (i32, i32) {
    %c0_i32 = arith.constant 0 : i32
    return %arg0, %arg1 : i32, i32
  }
}

module attributes {stable_mosaic.version = 11 : i64} {
  func.func @_add_layernorm_kernel(%arg0: i32, %arg1: memref<32x128xf32, #tpu.memory_space<vmem>>, %arg2: memref<32x128xf32, #tpu.memory_space<vmem>>, %arg3: memref<1x128xf32, #tpu.memory_space<vmem>>, %arg4: memref<1x128xf32, #tpu.memory_space<vmem>>, %arg5: memref<32x128xf32, #tpu.memory_space<vmem>>) attributes {dimension_semantics = [#tpu.dimension_semantics<parallel>], iteration_bounds = array<i64: 1>, scalar_prefetch = 0 : i64, scratch_operands = 0 : i64, tpu.core_type = #tpu.core_type<tc>, window_params = [{transform_indices = @transform_0, window_bounds = array<i64: 32, 128>}, {transform_indices = @transform_1, window_bounds = array<i64: 32, 128>}, {pipeline_mode = #tpu.pipeline_mode<synchronous>, transform_indices = @transform_2, window_bounds = array<i64: 1, 128>}, {pipeline_mode = #tpu.pipeline_mode<synchronous>, transform_indices = @transform_3, window_bounds = array<i64: 1, 128>}, {transform_indices = @transform_4, window_bounds = array<i64: 32, 128>}]} {
    %c0 = arith.constant 0 : index
    %c0_0 = arith.constant 0 : index
    %0 = vector.load %arg1[%c0, %c0_0] : memref<32x128xf32, #tpu.memory_space<vmem>>, vector<32x128xf32>
    %c0_1 = arith.constant 0 : index
    %c0_2 = arith.constant 0 : index
    %1 = vector.load %arg2[%c0_1, %c0_2] : memref<32x128xf32, #tpu.memory_space<vmem>>, vector<32x128xf32>
    %2 = arith.addf %0, %1 : vector<32x128xf32>
    %c0_3 = arith.constant 0 : index
    %c0_4 = arith.constant 0 : index
    %3 = vector.load %arg3[%c0_3, %c0_4] : memref<1x128xf32, #tpu.memory_space<vmem>>, vector<1x128xf32>
    %c0_5 = arith.constant 0 : index
    %c0_6 = arith.constant 0 : index
    %4 = vector.load %arg4[%c0_5, %c0_6] : memref<1x128xf32, #tpu.memory_space<vmem>>, vector<1x128xf32>
    %cst = arith.constant dense<0.000000e+00> : vector<32xf32>
    %5 = vector.multi_reduction <add>, %2, %cst [1] : vector<32x128xf32> to vector<32xf32>
    %6 = vector.shape_cast %5 : vector<32xf32> to vector<32x1xf32>
    %cst_7 = arith.constant 1.280000e+02 : f32
    %7 = vector.broadcast %cst_7 : f32 to vector<32x1xf32>
    %8 = arith.divf %6, %7 : vector<32x1xf32>
    %9 = vector.broadcast %8 : vector<32x1xf32> to vector<32x128xf32>
    %10 = arith.subf %2, %9 : vector<32x128xf32>
    %11 = arith.mulf %10, %10 : vector<32x128xf32>
    %cst_8 = arith.constant dense<0.000000e+00> : vector<32xf32>
    %12 = vector.multi_reduction <add>, %11, %cst_8 [1] : vector<32x128xf32> to vector<32xf32>
    %13 = vector.shape_cast %12 : vector<32xf32> to vector<32x1xf32>
    %cst_9 = arith.constant 1.280000e+02 : f32
    %14 = vector.broadcast %cst_9 : f32 to vector<32x1xf32>
    %15 = arith.divf %13, %14 : vector<32x1xf32>
    %cst_10 = arith.constant 9.99999974E-6 : f32
    %16 = vector.broadcast %cst_10 : f32 to vector<32x1xf32>
    %17 = arith.addf %15, %16 : vector<32x1xf32>
    %18 = math.rsqrt %17 : vector<32x1xf32>
    %19 = vector.broadcast %8 : vector<32x1xf32> to vector<32x128xf32>
    %20 = arith.subf %2, %19 : vector<32x128xf32>
    %21 = vector.broadcast %18 : vector<32x1xf32> to vector<32x128xf32>
    %22 = arith.mulf %20, %21 : vector<32x128xf32>
    %23 = vector.broadcast %3 : vector<1x128xf32> to vector<32x128xf32>
    %24 = arith.mulf %22, %23 : vector<32x128xf32>
    %25 = vector.broadcast %4 : vector<1x128xf32> to vector<32x128xf32>
    %26 = arith.addf %24, %25 : vector<32x128xf32>
    %c0_11 = arith.constant 0 : index
    %c0_12 = arith.constant 0 : index
    %27 = vector.load %arg5[%c0_11, %c0_12] : memref<32x128xf32, #tpu.memory_space<vmem>>, vector<32x128xf32>
    tpu.vector_store %arg5[%c0_11, %c0_12], %26 {strides = array<i32>} : memref<32x128xf32, #tpu.memory_space<vmem>>, vector<32x128xf32>,
    return
  }
  func.func @transform_0(%arg0: i32) -> (i32, i32) {
    %c0_i32 = arith.constant 0 : i32
    %c0_i32_0 = arith.constant 0 : i32
    return %arg0, %c0_i32 : i32, i32
  }
  func.func @transform_1(%arg0: i32) -> (i32, i32) {
    %c0_i32 = arith.constant 0 : i32
    %c0_i32_0 = arith.constant 0 : i32
    return %arg0, %c0_i32 : i32, i32
  }
  func.func @transform_2(%arg0: i32) -> (i32, i32) {
    %c0_i32 = arith.constant 0 : i32
    %c0_i32_0 = arith.constant 0 : i32
    %c0_i32_1 = arith.constant 0 : i32
    return %c0_i32, %c0_i32_0 : i32, i32
  }
  func.func @transform_3(%arg0: i32) -> (i32, i32) {
    %c0_i32 = arith.constant 0 : i32
    %c0_i32_0 = arith.constant 0 : i32
    %c0_i32_1 = arith.constant 0 : i32
    return %c0_i32, %c0_i32_0 : i32, i32
  }
  func.func @transform_4(%arg0: i32) -> (i32, i32) {
    %c0_i32 = arith.constant 0 : i32
    %c0_i32_0 = arith.constant 0 : i32
    return %arg0, %c0_i32 : i32, i32
  }
}

module attributes {stable_mosaic.version = 11 : i64} {
  func.func @_layernorm_kernel(%arg0: i32, %arg1: memref<32x128xf32, #tpu.memory_space<vmem>>, %arg2: memref<1x128xf32, #tpu.memory_space<vmem>>, %arg3: memref<1x128xf32, #tpu.memory_space<vmem>>, %arg4: memref<32x128xf32, #tpu.memory_space<vmem>>) attributes {dimension_semantics = [#tpu.dimension_semantics<parallel>], iteration_bounds = array<i64: 1>, scalar_prefetch = 0 : i64, scratch_operands = 0 : i64, tpu.core_type = #tpu.core_type<tc>, window_params = [{transform_indices = @transform_0, window_bounds = array<i64: 32, 128>}, {pipeline_mode = #tpu.pipeline_mode<synchronous>, transform_indices = @transform_1, window_bounds = array<i64: 1, 128>}, {pipeline_mode = #tpu.pipeline_mode<synchronous>, transform_indices = @transform_2, window_bounds = array<i64: 1, 128>}, {transform_indices = @transform_3, window_bounds = array<i64: 32, 128>}]} {
    %c0 = arith.constant 0 : index
    %c0_0 = arith.constant 0 : index
    %0 = vector.load %arg1[%c0, %c0_0] : memref<32x128xf32, #tpu.memory_space<vmem>>, vector<32x128xf32>
    %c0_1 = arith.constant 0 : index
    %c0_2 = arith.constant 0 : index
    %1 = vector.load %arg2[%c0_1, %c0_2] : memref<1x128xf32, #tpu.memory_space<vmem>>, vector<1x128xf32>
    %c0_3 = arith.constant 0 : index
    %c0_4 = arith.constant 0 : index
    %2 = vector.load %arg3[%c0_3, %c0_4] : memref<1x128xf32, #tpu.memory_space<vmem>>, vector<1x128xf32>
    %cst = arith.constant dense<0.000000e+00> : vector<32xf32>
    %3 = vector.multi_reduction <add>, %0, %cst [1] : vector<32x128xf32> to vector<32xf32>
    %4 = vector.shape_cast %3 : vector<32xf32> to vector<32x1xf32>
    %cst_5 = arith.constant 1.280000e+02 : f32
    %5 = vector.broadcast %cst_5 : f32 to vector<32x1xf32>
    %6 = arith.divf %4, %5 : vector<32x1xf32>
    %7 = vector.broadcast %6 : vector<32x1xf32> to vector<32x128xf32>
    %8 = arith.subf %0, %7 : vector<32x128xf32>
    %9 = arith.mulf %8, %8 : vector<32x128xf32>
    %cst_6 = arith.constant dense<0.000000e+00> : vector<32xf32>
    %10 = vector.multi_reduction <add>, %9, %cst_6 [1] : vector<32x128xf32> to vector<32xf32>
    %11 = vector.shape_cast %10 : vector<32xf32> to vector<32x1xf32>
    %cst_7 = arith.constant 1.280000e+02 : f32
    %12 = vector.broadcast %cst_7 : f32 to vector<32x1xf32>
    %13 = arith.divf %11, %12 : vector<32x1xf32>
    %cst_8 = arith.constant 9.99999974E-6 : f32
    %14 = vector.broadcast %cst_8 : f32 to vector<32x1xf32>
    %15 = arith.addf %13, %14 : vector<32x1xf32>
    %16 = math.rsqrt %15 : vector<32x1xf32>
    %17 = vector.broadcast %6 : vector<32x1xf32> to vector<32x128xf32>
    %18 = arith.subf %0, %17 : vector<32x128xf32>
    %19 = vector.broadcast %16 : vector<32x1xf32> to vector<32x128xf32>
    %20 = arith.mulf %18, %19 : vector<32x128xf32>
    %21 = vector.broadcast %1 : vector<1x128xf32> to vector<32x128xf32>
    %22 = arith.mulf %20, %21 : vector<32x128xf32>
    %23 = vector.broadcast %2 : vector<1x128xf32> to vector<32x128xf32>
    %24 = arith.addf %22, %23 : vector<32x128xf32>
    %c0_9 = arith.constant 0 : index
    %c0_10 = arith.constant 0 : index
    %25 = vector.load %arg4[%c0_9, %c0_10] : memref<32x128xf32, #tpu.memory_space<vmem>>, vector<32x128xf32>
    tpu.vector_store %arg4[%c0_9, %c0_10], %24 {strides = array<i32>} : memref<32x128xf32, #tpu.memory_space<vmem>>, vector<32x128xf32>,
    return
  }
  func.func @transform_0(%arg0: i32) -> (i32, i32) {
    %c0_i32 = arith.constant 0 : i32
    %c0_i32_0 = arith.constant 0 : i32
    return %arg0, %c0_i32 : i32, i32
  }
  func.func @transform_1(%arg0: i32) -> (i32, i32) {
    %c0_i32 = arith.constant 0 : i32
    %c0_i32_0 = arith.constant 0 : i32
    %c0_i32_1 = arith.constant 0 : i32
    return %c0_i32, %c0_i32_0 : i32, i32
  }
  func.func @transform_2(%arg0: i32) -> (i32, i32) {
    %c0_i32 = arith.constant 0 : i32
    %c0_i32_0 = arith.constant 0 : i32
    %c0_i32_1 = arith.constant 0 : i32
    return %c0_i32, %c0_i32_0 : i32, i32
  }
  func.func @transform_3(%arg0: i32) -> (i32, i32) {
    %c0_i32 = arith.constant 0 : i32
    %c0_i32_0 = arith.constant 0 : i32
    return %arg0, %c0_i32 : i32, i32
  }
}

module attributes {stable_mosaic.version = 11 : i64} {
  func.func @_matmul_kernel(%arg0: i32, %arg1: i32, %arg2: i32, %arg3: memref<32x128xbf16, #tpu.memory_space<vmem>>, %arg4: memref<128x256xbf16, #tpu.memory_space<vmem>>, %arg5: memref<1x256xf32, #tpu.memory_space<vmem>>, %arg6: memref<32x256xf32, #tpu.memory_space<vmem>>, %arg7: memref<32x256xf32, #tpu.memory_space<vmem>>) attributes {dimension_semantics = [#tpu.dimension_semantics<parallel>, #tpu.dimension_semantics<parallel>, #tpu.dimension_semantics<arbitrary>], iteration_bounds = array<i64: 1, 1, 1>, scalar_prefetch = 0 : i64, scratch_operands = 1 : i64, tpu.core_type = #tpu.core_type<tc>, window_params = [{transform_indices = @transform_0, window_bounds = array<i64: 32, 128>}, {transform_indices = @transform_1, window_bounds = array<i64: 128, 256>}, {transform_indices = @transform_2, window_bounds = array<i64: 1, 256>}, {transform_indices = @transform_3, window_bounds = array<i64: 32, 256>}]} {
    %c0_i32 = arith.constant 0 : i32
    %0 = arith.cmpi eq, %arg2, %c0_i32 : i32
    %1 = arith.extui %0 : i1 to i32
    %c0_i32_0 = arith.constant 0 : i32
    %2 = arith.cmpi ne, %1, %c0_i32_0 : i32
    scf.if %2 {
      %cst_10 = arith.constant 0.000000e+00 : f32
      %12 = vector.broadcast %cst_10 : f32 to vector<32x256xf32>
      %c0_11 = arith.constant 0 : index
      %c0_12 = arith.constant 0 : index
      %13 = vector.load %arg7[%c0_11, %c0_12] : memref<32x256xf32, #tpu.memory_space<vmem>>, vector<32x256xf32>
      tpu.vector_store %arg7[%c0_11, %c0_12], %12 {strides = array<i32>} : memref<32x256xf32, #tpu.memory_space<vmem>>, vector<32x256xf32>,
    } else {
    }
    %c0 = arith.constant 0 : index
    %c0_1 = arith.constant 0 : index
    %3 = vector.load %arg7[%c0, %c0_1] : memref<32x256xf32, #tpu.memory_space<vmem>>, vector<32x256xf32>
    %c0_2 = arith.constant 0 : index
    %c0_3 = arith.constant 0 : index
    %4 = vector.load %arg3[%c0_2, %c0_3] : memref<32x128xbf16, #tpu.memory_space<vmem>>, vector<32x128xbf16>
    %c0_4 = arith.constant 0 : index
    %c0_5 = arith.constant 0 : index
    %5 = vector.load %arg4[%c0_4, %c0_5] : memref<128x256xbf16, #tpu.memory_space<vmem>>, vector<128x256xbf16>
    %cst = arith.constant dense<0.000000e+00> : vector<32x256xf32>
    %6 = tpu.matmul %4, %5, %cst {dimension_numbers = #tpu.dot_dimension_numbers<[1], [0], [0], [1], [0, 0, 1, 1], [], []>} : vector<32x128xbf16>, vector<128x256xbf16>, vector<32x256xf32> -> vector<32x256xf32>
    %7 = arith.addf %3, %6 : vector<32x256xf32>
    %c0_6 = arith.constant 0 : index
    %c0_7 = arith.constant 0 : index
    %8 = vector.load %arg7[%c0_6, %c0_7] : memref<32x256xf32, #tpu.memory_space<vmem>>, vector<32x256xf32>
    tpu.vector_store %arg7[%c0_6, %c0_7], %7 {strides = array<i32>} : memref<32x256xf32, #tpu.memory_space<vmem>>, vector<32x256xf32>,
    %c0_i32_8 = arith.constant 0 : i32
    %9 = arith.cmpi eq, %arg2, %c0_i32_8 : i32
    %10 = arith.extui %9 : i1 to i32
    %c0_i32_9 = arith.constant 0 : i32
    %11 = arith.cmpi ne, %10, %c0_i32_9 : i32
    scf.if %11 {
      %c0_10 = arith.constant 0 : index
      %c0_11 = arith.constant 0 : index
      %12 = vector.load %arg7[%c0_10, %c0_11] : memref<32x256xf32, #tpu.memory_space<vmem>>, vector<32x256xf32>
      %c0_12 = arith.constant 0 : index
      %c0_13 = arith.constant 0 : index
      %13 = vector.load %arg5[%c0_12, %c0_13] : memref<1x256xf32, #tpu.memory_space<vmem>>, vector<1x256xf32>
      %14 = vector.broadcast %13 : vector<1x256xf32> to vector<32x256xf32>
      %15 = arith.addf %12, %14 : vector<32x256xf32>
      %c0_14 = arith.constant 0 : index
      %c0_15 = arith.constant 0 : index
      %16 = vector.load %arg6[%c0_14, %c0_15] : memref<32x256xf32, #tpu.memory_space<vmem>>, vector<32x256xf32>
      tpu.vector_store %arg6[%c0_14, %c0_15], %15 {strides = array<i32>} : memref<32x256xf32, #tpu.memory_space<vmem>>, vector<32x256xf32>,
    } else {
    }
    return
  }
  func.func @transform_0(%arg0: i32, %arg1: i32, %arg2: i32) -> (i32, i32) {
    %c0_i32 = arith.constant 0 : i32
    return %arg0, %arg2 : i32, i32
  }
  func.func @transform_1(%arg0: i32, %arg1: i32, %arg2: i32) -> (i32, i32) {
    %c0_i32 = arith.constant 0 : i32
    return %arg2, %arg1 : i32, i32
  }
  func.func @transform_2(%arg0: i32, %arg1: i32, %arg2: i32) -> (i32, i32) {
    %c0_i32 = arith.constant 0 : i32
    %c0_i32_0 = arith.constant 0 : i32
    return %c0_i32, %arg1 : i32, i32
  }
  func.func @transform_3(%arg0: i32, %arg1: i32, %arg2: i32) -> (i32, i32) {
    %c0_i32 = arith.constant 0 : i32
    return %arg0, %arg1 : i32, i32
  }
}

module attributes {stable_mosaic.version = 11 : i64} {
  func.func @_matmul_kernel(%arg0: i32, %arg1: i32, %arg2: i32, %arg3: memref<32x256xbf16, #tpu.memory_space<vmem>>, %arg4: memref<256x128xbf16, #tpu.memory_space<vmem>>, %arg5: memref<1x128xf32, #tpu.memory_space<vmem>>, %arg6: memref<32x128xf32, #tpu.memory_space<vmem>>, %arg7: memref<32x128xf32, #tpu.memory_space<vmem>>) attributes {dimension_semantics = [#tpu.dimension_semantics<parallel>, #tpu.dimension_semantics<parallel>, #tpu.dimension_semantics<arbitrary>], iteration_bounds = array<i64: 1, 1, 1>, scalar_prefetch = 0 : i64, scratch_operands = 1 : i64, tpu.core_type = #tpu.core_type<tc>, window_params = [{transform_indices = @transform_0, window_bounds = array<i64: 32, 256>}, {transform_indices = @transform_1, window_bounds = array<i64: 256, 128>}, {transform_indices = @transform_2, window_bounds = array<i64: 1, 128>}, {transform_indices = @transform_3, window_bounds = array<i64: 32, 128>}]} {
    %c0_i32 = arith.constant 0 : i32
    %0 = arith.cmpi eq, %arg2, %c0_i32 : i32
    %1 = arith.extui %0 : i1 to i32
    %c0_i32_0 = arith.constant 0 : i32
    %2 = arith.cmpi ne, %1, %c0_i32_0 : i32
    scf.if %2 {
      %cst_10 = arith.constant 0.000000e+00 : f32
      %12 = vector.broadcast %cst_10 : f32 to vector<32x128xf32>
      %c0_11 = arith.constant 0 : index
      %c0_12 = arith.constant 0 : index
      %13 = vector.load %arg7[%c0_11, %c0_12] : memref<32x128xf32, #tpu.memory_space<vmem>>, vector<32x128xf32>
      tpu.vector_store %arg7[%c0_11, %c0_12], %12 {strides = array<i32>} : memref<32x128xf32, #tpu.memory_space<vmem>>, vector<32x128xf32>,
    } else {
    }
    %c0 = arith.constant 0 : index
    %c0_1 = arith.constant 0 : index
    %3 = vector.load %arg7[%c0, %c0_1] : memref<32x128xf32, #tpu.memory_space<vmem>>, vector<32x128xf32>
    %c0_2 = arith.constant 0 : index
    %c0_3 = arith.constant 0 : index
    %4 = vector.load %arg3[%c0_2, %c0_3] : memref<32x256xbf16, #tpu.memory_space<vmem>>, vector<32x256xbf16>
    %c0_4 = arith.constant 0 : index
    %c0_5 = arith.constant 0 : index
    %5 = vector.load %arg4[%c0_4, %c0_5] : memref<256x128xbf16, #tpu.memory_space<vmem>>, vector<256x128xbf16>
    %cst = arith.constant dense<0.000000e+00> : vector<32x128xf32>
    %6 = tpu.matmul %4, %5, %cst {dimension_numbers = #tpu.dot_dimension_numbers<[1], [0], [0], [1], [0, 0, 1, 1], [], []>} : vector<32x256xbf16>, vector<256x128xbf16>, vector<32x128xf32> -> vector<32x128xf32>
    %7 = arith.addf %3, %6 : vector<32x128xf32>
    %c0_6 = arith.constant 0 : index
    %c0_7 = arith.constant 0 : index
    %8 = vector.load %arg7[%c0_6, %c0_7] : memref<32x128xf32, #tpu.memory_space<vmem>>, vector<32x128xf32>
    tpu.vector_store %arg7[%c0_6, %c0_7], %7 {strides = array<i32>} : memref<32x128xf32, #tpu.memory_space<vmem>>, vector<32x128xf32>,
    %c0_i32_8 = arith.constant 0 : i32
    %9 = arith.cmpi eq, %arg2, %c0_i32_8 : i32
    %10 = arith.extui %9 : i1 to i32
    %c0_i32_9 = arith.constant 0 : i32
    %11 = arith.cmpi ne, %10, %c0_i32_9 : i32
    scf.if %11 {
      %c0_10 = arith.constant 0 : index
      %c0_11 = arith.constant 0 : index
      %12 = vector.load %arg7[%c0_10, %c0_11] : memref<32x128xf32, #tpu.memory_space<vmem>>, vector<32x128xf32>
      %c0_12 = arith.constant 0 : index
      %c0_13 = arith.constant 0 : index
      %13 = vector.load %arg5[%c0_12, %c0_13] : memref<1x128xf32, #tpu.memory_space<vmem>>, vector<1x128xf32>
      %14 = vector.broadcast %13 : vector<1x128xf32> to vector<32x128xf32>
      %15 = arith.addf %12, %14 : vector<32x128xf32>
      %c0_14 = arith.constant 0 : index
      %c0_15 = arith.constant 0 : index
      %16 = vector.load %arg6[%c0_14, %c0_15] : memref<32x128xf32, #tpu.memory_space<vmem>>, vector<32x128xf32>
      tpu.vector_store %arg6[%c0_14, %c0_15], %15 {strides = array<i32>} : memref<32x128xf32, #tpu.memory_space<vmem>>, vector<32x128xf32>,
    } else {
    }
    return
  }
  func.func @transform_0(%arg0: i32, %arg1: i32, %arg2: i32) -> (i32, i32) {
    %c0_i32 = arith.constant 0 : i32
    return %arg0, %arg2 : i32, i32
  }
  func.func @transform_1(%arg0: i32, %arg1: i32, %arg2: i32) -> (i32, i32) {
    %c0_i32 = arith.constant 0 : i32
    return %arg2, %arg1 : i32, i32
  }
  func.func @transform_2(%arg0: i32, %arg1: i32, %arg2: i32) -> (i32, i32) {
    %c0_i32 = arith.constant 0 : i32
    %c0_i32_0 = arith.constant 0 : i32
    return %c0_i32, %arg1 : i32, i32
  }
  func.func @transform_3(%arg0: i32, %arg1: i32, %arg2: i32) -> (i32, i32) {
    %c0_i32 = arith.constant 0 : i32
    return %arg0, %arg1 : i32, i32
  }
}

module attributes {stable_mosaic.version = 11 : i64} {
  func.func @_matmul_kernel(%arg0: i32, %arg1: i32, %arg2: i32, %arg3: memref<32x128xbf16, #tpu.memory_space<vmem>>, %arg4: memref<128x256xbf16, #tpu.memory_space<vmem>>, %arg5: memref<1x256xf32, #tpu.memory_space<vmem>>, %arg6: memref<32x256xf32, #tpu.memory_space<vmem>>, %arg7: memref<32x256xf32, #tpu.memory_space<vmem>>) attributes {dimension_semantics = [#tpu.dimension_semantics<parallel>, #tpu.dimension_semantics<parallel>, #tpu.dimension_semantics<arbitrary>], iteration_bounds = array<i64: 1, 1, 1>, scalar_prefetch = 0 : i64, scratch_operands = 1 : i64, tpu.core_type = #tpu.core_type<tc>, window_params = [{transform_indices = @transform_0, window_bounds = array<i64: 32, 128>}, {transform_indices = @transform_1, window_bounds = array<i64: 128, 256>}, {transform_indices = @transform_2, window_bounds = array<i64: 1, 256>}, {transform_indices = @transform_3, window_bounds = array<i64: 32, 256>}]} {
    %c0_i32 = arith.constant 0 : i32
    %0 = arith.cmpi eq, %arg2, %c0_i32 : i32
    %1 = arith.extui %0 : i1 to i32
    %c0_i32_0 = arith.constant 0 : i32
    %2 = arith.cmpi ne, %1, %c0_i32_0 : i32
    scf.if %2 {
      %cst_10 = arith.constant 0.000000e+00 : f32
      %12 = vector.broadcast %cst_10 : f32 to vector<32x256xf32>
      %c0_11 = arith.constant 0 : index
      %c0_12 = arith.constant 0 : index
      %13 = vector.load %arg7[%c0_11, %c0_12] : memref<32x256xf32, #tpu.memory_space<vmem>>, vector<32x256xf32>
      tpu.vector_store %arg7[%c0_11, %c0_12], %12 {strides = array<i32>} : memref<32x256xf32, #tpu.memory_space<vmem>>, vector<32x256xf32>,
    } else {
    }
    %c0 = arith.constant 0 : index
    %c0_1 = arith.constant 0 : index
    %3 = vector.load %arg7[%c0, %c0_1] : memref<32x256xf32, #tpu.memory_space<vmem>>, vector<32x256xf32>
    %c0_2 = arith.constant 0 : index
    %c0_3 = arith.constant 0 : index
    %4 = vector.load %arg3[%c0_2, %c0_3] : memref<32x128xbf16, #tpu.memory_space<vmem>>, vector<32x128xbf16>
    %c0_4 = arith.constant 0 : index
    %c0_5 = arith.constant 0 : index
    %5 = vector.load %arg4[%c0_4, %c0_5] : memref<128x256xbf16, #tpu.memory_space<vmem>>, vector<128x256xbf16>
    %cst = arith.constant dense<0.000000e+00> : vector<32x256xf32>
    %6 = tpu.matmul %4, %5, %cst {dimension_numbers = #tpu.dot_dimension_numbers<[1], [0], [0], [1], [0, 0, 1, 1], [], []>} : vector<32x128xbf16>, vector<128x256xbf16>, vector<32x256xf32> -> vector<32x256xf32>
    %7 = arith.addf %3, %6 : vector<32x256xf32>
    %c0_6 = arith.constant 0 : index
    %c0_7 = arith.constant 0 : index
    %8 = vector.load %arg7[%c0_6, %c0_7] : memref<32x256xf32, #tpu.memory_space<vmem>>, vector<32x256xf32>
    tpu.vector_store %arg7[%c0_6, %c0_7], %7 {strides = array<i32>} : memref<32x256xf32, #tpu.memory_space<vmem>>, vector<32x256xf32>,
    %c0_i32_8 = arith.constant 0 : i32
    %9 = arith.cmpi eq, %arg2, %c0_i32_8 : i32
    %10 = arith.extui %9 : i1 to i32
    %c0_i32_9 = arith.constant 0 : i32
    %11 = arith.cmpi ne, %10, %c0_i32_9 : i32
    scf.if %11 {
      %c0_10 = arith.constant 0 : index
      %c0_11 = arith.constant 0 : index
      %12 = vector.load %arg7[%c0_10, %c0_11] : memref<32x256xf32, #tpu.memory_space<vmem>>, vector<32x256xf32>
      %c0_12 = arith.constant 0 : index
      %c0_13 = arith.constant 0 : index
      %13 = vector.load %arg5[%c0_12, %c0_13] : memref<1x256xf32, #tpu.memory_space<vmem>>, vector<1x256xf32>
      %14 = vector.broadcast %13 : vector<1x256xf32> to vector<32x256xf32>
      %15 = arith.addf %12, %14 : vector<32x256xf32>
      %cst_14 = arith.constant 0.000000e+00 : f32
      %16 = vector.broadcast %cst_14 : f32 to vector<32x256xf32>
      %17 = arith.maximumf %15, %16 : vector<32x256xf32>
      %c0_15 = arith.constant 0 : index
      %c0_16 = arith.constant 0 : index
      %18 = vector.load %arg6[%c0_15, %c0_16] : memref<32x256xf32, #tpu.memory_space<vmem>>, vector<32x256xf32>
      tpu.vector_store %arg6[%c0_15, %c0_16], %17 {strides = array<i32>} : memref<32x256xf32, #tpu.memory_space<vmem>>, vector<32x256xf32>,
    } else {
    }
    return
  }
  func.func @transform_0(%arg0: i32, %arg1: i32, %arg2: i32) -> (i32, i32) {
    %c0_i32 = arith.constant 0 : i32
    return %arg0, %arg2 : i32, i32
  }
  func.func @transform_1(%arg0: i32, %arg1: i32, %arg2: i32) -> (i32, i32) {
    %c0_i32 = arith.constant 0 : i32
    return %arg2, %arg1 : i32, i32
  }
  func.func @transform_2(%arg0: i32, %arg1: i32, %arg2: i32) -> (i32, i32) {
    %c0_i32 = arith.constant 0 : i32
    %c0_i32_0 = arith.constant 0 : i32
    return %c0_i32, %arg1 : i32, i32
  }
  func.func @transform_3(%arg0: i32, %arg1: i32, %arg2: i32) -> (i32, i32) {
    %c0_i32 = arith.constant 0 : i32
    return %arg0, %arg1 : i32, i32
  }
}

</mosaic_0001>

<bundles_post_ra>
// kernel: model_forward.56
= control target key start
LH: loop header
LB: loop body
LE: loop exit
PB: predicated region body
PF: predicated region fallthrough
CT: control target
= control target key end

     0   :  { %v496_v1 = vmov 0   ;;  %v362_v27 = vlaneseq  ;;  %s634_s1 = inlined_call_operand.vmem [shape: bf16[128,384], index: 1, kind: input, shape index: {}]   ;;  %s635_s0 = inlined_call_operand.vmem [shape: bf16[32,128], index: 0, kind: input, shape index: {}]   ;;  %s636_s2 = inlined_call_operand.vmem [shape: f32[1,384], index: 2, kind: input, shape index: {}]   ;;  %s637_s3 = inlined_call_operand.vmem [shape: f32[32,384], index: 3, kind: output, shape index: {}]  }
   0x1   :  { %v462_v0 = vld [vmem:[%s634_s1 + $0x4] ss:$12 sps:$4 sm:$0xff]   ;;  %251 = vmatprep.mubr.bf16.mxu0 %v496_v1  ;;  %v464_v2 = vld [vmem:[%s634_s1] ss:$12 sps:$4 sm:$0xff]   ;;  %v465_v3 = vld [vmem:[%s634_s1 + $0x1c] ss:$12 sps:$4 sm:$0xff]  }
   0x2   :  { %219 = vmatprep.subr.bf16.mxu0 %v462_v0  ;;  %v467_v4 = vld [vmem:[%s634_s1 + $0x18] ss:$12 sps:$4 sm:$0xff]   ;;  %v468_v5 = vld [vmem:[%s634_s1 + $0x8] ss:$12 sps:$4 sm:$0xff]   ;;  %v472_v7 = vld [vmem:[%s634_s1 + $0x20] ss:$12 sps:$4 sm:$0xff]  }
   0x3   :  { %220 = vmatpush1.bf16.msra.mxu0 %v464_v2  ;;  %v469_v6 = vld [vmem:[%s634_s1 + $0x34] ss:$12 sps:$4 sm:$0xff]   ;;  %441 = vmatprep.subr.bf16.mxu1 %v468_v5  ;;  %v471_v8 = vld [vmem:[%s634_s1 + $0x30] ss:$12 sps:$4 sm:$0xff]   ;;  %v473_v9 = vld [vmem:[%s634_s1 + $0x4c] ss:$12 sps:$4 sm:$0xff]  }
   0x4   :  { %221 = vmatprep.subr.bf16.mxu0 %v465_v3  ;;  %442 = vmatpush3.bf16.msra.mxu1 %v468_v5  ;;  %v476_v10 = vld [vmem:[%s634_s1 + $0x38] ss:$12 sps:$4 sm:$0xff]   ;;  %v475_v11 = vld [vmem:[%s634_s1 + $0x48] ss:$12 sps:$4 sm:$0xff]   ;;  %v480_v12 = vld [vmem:[%s634_s1 + $0x50] ss:$12 sps:$4 sm:$0xff]  }
   0x5   :  { %443 = vmatprep.subr.bf16.mxu1 %v472_v7  ;;  %v477_v13 = vld [vmem:[%s634_s1 + $0x64] ss:$12 sps:$4 sm:$0xff]   ;;  %v479_v14 = vld [vmem:[%s634_s1 + $0x60] ss:$12 sps:$4 sm:$0xff]   ;;  %v484_v15 = vld [vmem:[%s634_s1 + $0x68] ss:$12 sps:$4 sm:$0xff]  }
   0x6   :  { %v481_v16 = vld [vmem:[%s634_s1 + $0x7c] ss:$12 sps:$4 sm:$0xff]   ;;  %v483_v17 = vld [vmem:[%s634_s1 + $0x78] ss:$12 sps:$4 sm:$0xff]   ;;  %v488_v19 = vld [vmem:[%s634_s1 + $0x80] ss:$12 sps:$4 sm:$0xff]  }
   0x7   :  { %222 = vmatpush1.bf16.msra.mxu0 %v467_v4  ;;  %v493_v18 = vld [vmem:[%s635_s0] sm:$0xff]   ;;  %v487_v21 = vld [vmem:[%s634_s1 + $0x90] ss:$12 sps:$4 sm:$0xff]   ;;  %v489_v23 = vld [vmem:[%s634_s1 + $0xac] ss:$12 sps:$4 sm:$0xff]   ;;  %v363_v28 = vshrl.u32 %v362_v27, 7 }
   0x8   :  { %223 = vmatprep.subr.bf16.mxu0 %v469_v6  ;;  %444 = vmatpush3.bf16.msra.mxu1 %v472_v7  ;;  %v485_v20 = vld [vmem:[%s634_s1 + $0x94] ss:$12 sps:$4 sm:$0xff]   ;;  %v492_v22 = vld [vmem:[%s634_s1 + $0x98] ss:$12 sps:$4 sm:$0xff]   ;;  %v494_v25 = vld [vmem:[%s634_s1 + $0xb0] ss:$12 sps:$4 sm:$0xff]  }
   0x9   :  { %445 = vmatprep.subr.bf16.mxu1 %v476_v10  ;;  %457 = vmatprep.mubr.bf16.mxu1 %v493_v18  ;;  %v491_v24 = vld [vmem:[%s634_s1 + $0xa8] ss:$12 sps:$4 sm:$0xff]   ;;  %v364_v29 = vsub.s32 0, %v363_v28  ;;  %v360_v30 = vld [vmem:[%s636_s2] sm:$0x7]  ;;  %v368_v31 = vsub.s32 1, %v363_v28 }
   0xa   :  { %v495_v26 = vld [vmem:[%s635_s0 + $0x8] sm:$0xff]   ;;  %v372_v32 = vsub.s32 2, %v363_v28 }
   0xb   :  { %224 = vmatpush1.bf16.msra.mxu0 %v471_v8  ;;  %v365_v33 = vrot.slane %v360_v30, %v364_v29  ;;  %v369_v34 = vrot.slane %v360_v30, %v368_v31 }
   0xc   :  { %225 = vmatprep.subr.bf16.mxu0 %v473_v9  ;;  %446 = vmatpush3.bf16.msra.mxu1 %v476_v10  ;;  %v373_v36 = vrot.slane %v360_v30, %v372_v32 }
   0xd   :  { %447 = vmatprep.subr.bf16.mxu1 %v480_v12 }
   0xf   :  { %226 = vmatpush1.bf16.msra.mxu0 %v475_v11 }
  0x10   :  { %227 = vmatprep.subr.bf16.mxu0 %v477_v13  ;;  %448 = vmatpush3.bf16.msra.mxu1 %v480_v12 }
  0x11   :  { %449 = vmatprep.subr.bf16.mxu1 %v484_v15 }
  0x13   :  { %228 = vmatpush1.bf16.msra.mxu0 %v479_v14 }
  0x14   :  { %229 = vmatprep.subr.bf16.mxu0 %v481_v16  ;;  %450 = vmatpush3.bf16.msra.mxu1 %v484_v15 }
  0x15   :  { %451 = vmatprep.subr.bf16.mxu1 %v488_v19 }
  0x17   :  { %230 = vmatpush1.bf16.msra.mxu0 %v483_v17 }
  0x18   :  { %231 = vmatprep.subr.bf16.mxu0 %v485_v20  ;;  %452 = vmatpush3.bf16.msra.mxu1 %v488_v19 }
  0x19   :  { %453 = vmatprep.subr.bf16.mxu1 %v492_v22 }
  0x1b   :  { %232 = vmatpush1.bf16.msra.mxu0 %v487_v21 }
  0x1c   :  { %233 = vmatprep.subr.bf16.mxu0 %v489_v23  ;;  %454 = vmatpush3.bf16.msra.mxu1 %v492_v22 }
  0x1d   :  { %455 = vmatprep.subr.bf16.mxu1 %v494_v25 }
  0x1f   :  { %234 = vmatpush1.bf16.msra.mxu0 %v491_v24 }
  0x20   :  { %456 = vmatpush3.bf16.msra.mxu1 %v494_v25 }
  0x22   :  { %252 = vmatmul.mubr.bf16.vlgmr.msra.gmra.mrb[0].mxu0 %v493_v18 }
  0x23   :  { %261 = vmatprep.mubr.bf16.mxu0 %v496_v1  ;;  %458 = vmatmul.mubr.bf16.vlgmr.msra.gmra.mrb[0].mxu1 %v495_v26 }
  0x2a   :  { %262 = vmatmul.mubr.bf16.gmra.mrb[4].mxu0 %v495_v26 }
  0xf5   :  { %v253_v35 = vpop.f32.mrb[0].mxu0 }
  0xf6   :  { %v377_v37 = vadd.f32 %v365_v33, %v253_v35  ;;  %v255_v38 = vpop.f32.mrb[1].mxu0  ;;  %v459_v43 = vpop.f32.mrb[0].mxu1 }
  0xf7   :  { %v378_v39 = vadd.f32 %v369_v34, %v255_v38  ;;  %v257_v40 = vpop.f32.mrb[2].mxu0  ;;  %v385_v45 = vadd.f32 %v459_v43, %v373_v36  ;;  %v306_v46 = vpop.f32.mrb[1].mxu1 }
  0xf8   :  { %389 = vst [vmem:[%s637_s3] sm:$0xff] %v377_v37  ;;  %v380_v41 = vadd.f32 %v365_v33, %v257_v40  ;;  %v259_v42 = vpop.f32.mrb[3].mxu0  ;;  %v379_v47 = vadd.f32 %v373_v36, %v306_v46  ;;  %v460_v48 = vpop.f32.mrb[2].mxu1 }
  0xf9   :  { %390 = vst [vmem:[%s637_s3 + $0x8] sm:$0xff] %v378_v39  ;;  %v381_v44 = vadd.f32 %v369_v34, %v259_v42  ;;  %397 = vst [vmem:[%s637_s3 + $0x40] sm:$0xff] %v385_v45  ;;  %v388_v49 = vadd.f32 %v460_v48, %v373_v36  ;;  %v309_v50 = vpop.f32.mrb[3].mxu1 }
  0xfa   :  { %392 = vst [vmem:[%s637_s3 + $0x18] sm:$0xff] %v380_v41  ;;  %391 = vst [vmem:[%s637_s3 + $0x10] sm:$0xff] %v379_v47  ;;  %v382_v51 = vadd.f32 %v373_v36, %v309_v50 }
  0xfb   :  { %393 = vst [vmem:[%s637_s3 + $0x20] sm:$0xff] %v381_v44  ;;  %400 = vst [vmem:[%s637_s3 + $0x58] sm:$0xff] %v388_v49 }
  0xfc   :  { %394 = vst [vmem:[%s637_s3 + $0x28] sm:$0xff] %v382_v51 }
  0xfd   :  { %v263_v52 = vpop.f32.mrb[4].mxu0 }
  0xfe   :  { %v383_v53 = vadd.f32 %v365_v33, %v263_v52  ;;  %v265_v54 = vpop.f32.mrb[5].mxu0 }
  0xff   :  { %v384_v55 = vadd.f32 %v369_v34, %v265_v54  ;;  %v267_v56 = vpop.f32.mrb[6].mxu0 }
 0x100   :  { %395 = vst [vmem:[%s637_s3 + $0x30] sm:$0xff] %v383_v53  ;;  %v386_v57 = vadd.f32 %v365_v33, %v267_v56  ;;  %v269_v58 = vpop.f32.mrb[7].mxu0 }
 0x101   :  { %396 = vst [vmem:[%s637_s3 + $0x38] sm:$0xff] %v384_v55  ;;  %v387_v59 = vadd.f32 %v369_v34, %v269_v58 }
 0x102   :  { %398 = vst [vmem:[%s637_s3 + $0x48] sm:$0xff] %v386_v57 }
 0x103   :  { %399 = vst [vmem:[%s637_s3 + $0x50] sm:$0xff] %v387_v59 }

// kernel: model_forward.58
= control target key start
LH: loop header
LB: loop body
LE: loop exit
PB: predicated region body
PF: predicated region fallthrough
CT: control target
= control target key end

     0   :  { %s306_s1 = inlined_call_operand.vmem [shape: bf16[128,128], index: 1, kind: input, shape index: {}]   ;;  %s307_s0 = inlined_call_operand.vmem [shape: bf16[32,128], index: 0, kind: input, shape index: {}]   ;;  %s308_s2 = inlined_call_operand.vmem [shape: f32[1,128], index: 2, kind: input, shape index: {}]   ;;  %s309_s3 = inlined_call_operand.vmem [shape: f32[32,128], index: 3, kind: output, shape index: {}]  }
   0x1   :  { %v231_v0 = vld [vmem:[%s306_s1] sm:$0xff]   ;;  %v232_v1 = vld [vmem:[%s306_s1 + $0x8] sm:$0xff]   ;;  %v233_v2 = vld [vmem:[%s306_s1 + $0x10] sm:$0xff]  }
   0x2   :  { %211 = vmatprep.subr.bf16.mxu0 %v231_v0  ;;  %v234_v3 = vld [vmem:[%s306_s1 + $0x18] sm:$0xff]   ;;  %v239_v4 = vld [vmem:[%s307_s0] sm:$0xff]   ;;  %v236_v6 = vld [vmem:[%s306_s1 + $0x28] sm:$0xff]  }
   0x3   :  { %212 = vmatpush3.bf16.msra.mxu0 %v231_v0  ;;  %227 = vmatprep.mubr.bf16.mxu0 %v239_v4  ;;  %v235_v5 = vld [vmem:[%s306_s1 + $0x20] sm:$0xff]   ;;  %v237_v7 = vld [vmem:[%s306_s1 + $0x30] sm:$0xff]   ;;  %v238_v8 = vld [vmem:[%s306_s1 + $0x38] sm:$0xff]  }
   0x4   :  { %213 = vmatprep.subr.bf16.mxu0 %v232_v1  ;;  %v240_v9 = vld [vmem:[%s307_s0 + $0x8] sm:$0xff]   ;;  %v200_v10 = vld [vmem:[%s308_s2] ss:$0 sm:$0xff] }
   0x7   :  { %214 = vmatpush3.bf16.msra.mxu0 %v232_v1 }
   0x8   :  { %215 = vmatprep.subr.bf16.mxu0 %v233_v2 }
   0xb   :  { %216 = vmatpush3.bf16.msra.mxu0 %v233_v2 }
   0xc   :  { %217 = vmatprep.subr.bf16.mxu0 %v234_v3 }
   0xf   :  { %218 = vmatpush3.bf16.msra.mxu0 %v234_v3 }
  0x10   :  { %219 = vmatprep.subr.bf16.mxu0 %v235_v5 }
  0x13   :  { %220 = vmatpush3.bf16.msra.mxu0 %v235_v5 }
  0x14   :  { %221 = vmatprep.subr.bf16.mxu0 %v236_v6 }
  0x17   :  { %222 = vmatpush3.bf16.msra.mxu0 %v236_v6 }
  0x18   :  { %223 = vmatprep.subr.bf16.mxu0 %v237_v7 }
  0x1b   :  { %224 = vmatpush3.bf16.msra.mxu0 %v237_v7 }
  0x1c   :  { %225 = vmatprep.subr.bf16.mxu0 %v238_v8 }
  0x1f   :  { %226 = vmatpush3.bf16.msra.mxu0 %v238_v8 }
  0x22   :  { %228 = vmatmul.mubr.bf16.vlgmr.msra.gmra.mrb[0].mxu0 %v240_v9 }
  0xf5   :  { %v229_v11 = vpop.f32.mrb[0].mxu0 }
  0xf6   :  { %v180_v12 = vadd.f32 %v229_v11, %v200_v10  ;;  %v141_v13 = vpop.f32.mrb[1].mxu0 }
  0xf7   :  { %v178_v14 = vadd.f32 %v200_v10, %v141_v13  ;;  %v230_v15 = vpop.f32.mrb[2].mxu0 }
  0xf8   :  { %184 = vst [vmem:[%s309_s3 + $0x10] sm:$0xff] %v180_v12  ;;  %v181_v16 = vadd.f32 %v230_v15, %v200_v10  ;;  %v144_v17 = vpop.f32.mrb[3].mxu0 }
  0xf9   :  { %182 = vst [vmem:[%s309_s3] sm:$0xff] %v178_v14  ;;  %v179_v18 = vadd.f32 %v200_v10, %v144_v17 }
  0xfa   :  { %185 = vst [vmem:[%s309_s3 + $0x18] sm:$0xff] %v181_v16 }
  0xfb   :  { %183 = vst [vmem:[%s309_s3 + $0x8] sm:$0xff] %v179_v18 }

// kernel: model_forward.57
= control target key start
LH: loop header
LB: loop body
LE: loop exit
PB: predicated region body
PF: predicated region fallthrough
CT: control target
= control target key end

     0   :  { %s1405_s12 = smov 0   ;;  %s1603_s0 = inlined_call_operand.vmem [shape: bf16[16,8,32], index: 0, kind: input, shape index: {}]   ;;  %s1604_s1 = inlined_call_operand.vmem [shape: bf16[16,8,32], index: 1, kind: input, shape index: {}]   ;;  %s1605_s2 = inlined_call_operand.vmem [shape: bf16[16,8,32], index: 2, kind: input, shape index: {}]   ;;  %s1606_s3 = inlined_call_operand.vmem [shape: f32[16,8,32], index: 3, kind: output, shape index: {}]  }
   0x1 LB: > { %s1174_s13 = sadd.s32 4294967295, %s1381_s12   ;;  %p1178_p0 = scmp.ge.s32.totalorder %s1381_s12, 1  ;;  %s1381_s12 = sphi %s1405_s12, %s13_s12  }
   0x2   : > { %p160_p1 = scmp.lt.s32.totalorder %s1381_s12, 3 }
   0x4   : > { %p161_p2 = pnand %p1178_p0, %p160_p1 }
   0x5   : > { %s1179_s14 = sshll.u32 (!%p161_p2), %s1174_s13, 3  ;;  %v1383_v0 = vmov (!%p161_p2), 0.0   ;;  %vm1384_vm0 = vmmov (!%p161_p2), 0   ;;  %vm243_vm1 = vcmask (!%p161_p2), 261120   ;;  %vm620_vm2 = vcmask (!%p161_p2), 64512  }
   0x6   : > { %164 = sbr.rel (%p161_p2) target bundleno = 798 (0x31e), region = 32  ;;  %1237 = vmatprep.subr.bf16.mxu0 (!%p161_p2), %v1383_v0  ;;  %1243 = vmatprep.subr.bf16.mxu1 (!%p161_p2), %v1383_v0  ;;  %p195_p3 = scmp.lt.s32.totalorder (!%p161_p2), %s1179_s14, 15  ;;  %vm720_vm3 = vcmask (!%p161_p2), 1043456  }
   0x7   : > { %1239 = vmatprep.mubr.msk.bf16.mxu0 (!%p161_p2), %vm1384_vm0, %v1383_v0  ;;  %1245 = vmatprep.mubr.msk.bf16.mxu1 (!%p161_p2), %vm1384_vm0, %v1383_v0 }
   0xd   : > { %s1608_s14 = smov (!%p195_p3, %s1179_s14), 15 }
   0xe   : > { %s1422_s15 = sshll.u32 %s1608_s14, 2  ;;  %s1186_s25 = sshll.u32 %s1608_s14, 3 }
   0xf   : > { %s1428_s18 = scalar_lea.vmem %s1604_s1, %s1422_s15  ;;  %s1438_s21 = scalar_lea.vmem %s1603_s0, %s1422_s15 }
  0x10   : > { %v227_v1 = vld [vmem:[%s1428_s18] sm:$0xf]  ;;  %v228_v2 = vld [vmem:[%s1428_s18 + $0x4] sm:$0xf]  ;;  %v229_v5 = vld [vmem:[%s1428_s18 + $0x8] sm:$0xf]  ;;  %s210_s24 = scalar_lea.vmem %s1605_s2, %s1422_s15  ;;  %s1582_s28 = scalar_lea.vmem %s1606_s3, %s1186_s25 }
  0x11   : > { %v248_v3 = vsel %vm243_vm1, %v227_v1, 0  ;;  %v294_v4 = vsel %vm243_vm1, %v228_v2, 0  ;;  %v230_v6 = vld [vmem:[%s1428_s18 + $0xc] sm:$0xf]  ;;  %v219_v7 = vld [vmem:[%s1438_s21] sm:$0xf] }
  0x12   : > { %1238 = vmatpush3.bf16.xpose.msra.mxu0 %v248_v3  ;;  %1244 = vmatpush3.bf16.xpose.msra.mxu1 %v294_v4  ;;  %v220_v8 = vld [vmem:[%s1438_s21 + $0x4] sm:$0xf]  ;;  %v340_v9 = vsel %vm243_vm1, %v229_v5, 0  ;;  %v386_v10 = vsel %vm243_vm1, %v230_v6, 0  ;;  %v231_v11 = vld [vmem:[%s1428_s18 + $0x10] sm:$0xf] }
  0x13   : > { %1249 = vmatprep.subr.bf16.mxu0 %v1383_v0  ;;  %1255 = vmatprep.subr.bf16.mxu1 %v1383_v0  ;;  %v232_v12 = vld [vmem:[%s1428_s18 + $0x14] sm:$0xf]  ;;  %v221_v13 = vld [vmem:[%s1438_s21 + $0x8] sm:$0xf]  ;;  %v222_v14 = vld [vmem:[%s1438_s21 + $0xc] sm:$0xf] }
  0x14   : > { %v432_v15 = vsel %vm243_vm1, %v231_v11, 0  ;;  %v478_v16 = vsel %vm243_vm1, %v232_v12, 0  ;;  %v233_v17 = vld [vmem:[%s1428_s18 + $0x18] sm:$0xf]  ;;  %v234_v18 = vld [vmem:[%s1428_s18 + $0x1c] sm:$0xf] }
  0x15   : > { %v223_v19 = vld [vmem:[%s1438_s21 + $0x10] sm:$0xf]  ;;  %v224_v20 = vld [vmem:[%s1438_s21 + $0x14] sm:$0xf]  ;;  %v524_v21 = vsel %vm243_vm1, %v233_v17, 0  ;;  %v570_v22 = vsel %vm243_vm1, %v234_v18, 0 }
  0x16   : > { %v225_v23 = vld [vmem:[%s1438_s21 + $0x18] sm:$0xf]  ;;  %v226_v24 = vld [vmem:[%s1438_s21 + $0x1c] sm:$0xf] }
  0x19   : > { %1240 = vmatmul.mubr.msk.bf16.vlgmr.msra.gmra.mrb[0].mxu0 %vm243_vm1, %v219_v7  ;;  %1246 = vmatmul.mubr.msk.bf16.vlgmr.msra.gmra.mrb[0].mxu1 %vm243_vm1, %v220_v8 }
  0x1a   : > { %1250 = vmatpush3.bf16.xpose.msra.mxu0 %v340_v9  ;;  %1256 = vmatpush3.bf16.xpose.msra.mxu1 %v386_v10 }
  0x1b   : > { %1251 = vmatprep.mubr.msk.bf16.mxu0 %vm1384_vm0, %v1383_v0  ;;  %1257 = vmatprep.mubr.msk.bf16.mxu1 %vm1384_vm0, %v1383_v0 }
  0x1c   : > { %1261 = vmatprep.subr.bf16.mxu0 %v1383_v0  ;;  %1267 = vmatprep.subr.bf16.mxu1 %v1383_v0 }
  0x21   : > { %1252 = vmatmul.mubr.msk.bf16.vlgmr.msra.gmra.mrb[4].mxu0 %vm243_vm1, %v221_v13  ;;  %1258 = vmatmul.mubr.msk.bf16.vlgmr.msra.gmra.mrb[4].mxu1 %vm243_vm1, %v222_v14 }
  0x22   : > { %1262 = vmatpush3.bf16.xpose.msra.mxu0 %v432_v15  ;;  %1268 = vmatpush3.bf16.xpose.msra.mxu1 %v478_v16 }
  0x23   : > { %1263 = vmatprep.mubr.msk.bf16.mxu0 %vm1384_vm0, %v1383_v0  ;;  %1269 = vmatprep.mubr.msk.bf16.mxu1 %vm1384_vm0, %v1383_v0 }
  0x24   : > { %1273 = vmatprep.subr.bf16.mxu0 %v1383_v0  ;;  %1279 = vmatprep.subr.bf16.mxu1 %v1383_v0 }
  0x29   : > { %1264 = vmatmul.mubr.msk.bf16.vlgmr.msra.gmra.mrb[8].mxu0 %vm243_vm1, %v223_v19  ;;  %1270 = vmatmul.mubr.msk.bf16.vlgmr.msra.gmra.mrb[8].mxu1 %vm243_vm1, %v224_v20 }
  0x2a   : > { %1274 = vmatpush3.bf16.xpose.msra.mxu0 %v524_v21  ;;  %1280 = vmatpush3.bf16.xpose.msra.mxu1 %v570_v22 }
  0x2b   : > { %1275 = vmatprep.mubr.msk.bf16.mxu0 %vm1384_vm0, %v1383_v0  ;;  %1281 = vmatprep.mubr.msk.bf16.mxu1 %vm1384_vm0, %v1383_v0 }
  0x2c   : > { %1285 = vmatprep.subr.bf16.mxu0 %v1383_v0  ;;  %1291 = vmatprep.subr.bf16.mxu1 %v1383_v0 }
  0x31   : > { %1276 = vmatmul.mubr.msk.bf16.vlgmr.msra.gmra.mrb[12].mxu0 %vm243_vm1, %v225_v23  ;;  %1282 = vmatmul.mubr.msk.bf16.vlgmr.msra.gmra.mrb[12].mxu1 %vm243_vm1, %v226_v24 }
  0x32   : > { %1287 = vmatprep.mubr.msk.bf16.mxu0 %vm1384_vm0, %v1383_v0  ;;  %1293 = vmatprep.mubr.msk.bf16.mxu1 %vm1384_vm0, %v1383_v0 }
  0xec   : > { %v284_v25 = vpop.f32.mrb[0].mxu0  ;;  %v330_v26 = vpop.f32.mrb[0].mxu1 }
  0xed   : > { %v612_v27 = vmul.f32 0.17677669, %v284_v25  ;;  %v1241_v28 = vpop.f32.mrb[1].mxu0  ;;  %v613_v29 = vmul.f32 0.17677669, %v330_v26  ;;  %v1247_v30 = vpop.f32.mrb[1].mxu1 }
  0xee   : > { %v287_v31 = vpop.f32.mrb[2].mxu0  ;;  %v333_v32 = vpop.f32.mrb[2].mxu1 }
  0xef   : > { %v1242_v33 = vpop.f32.mrb[3].mxu0  ;;  %v621_v34 = vsel %vm620_vm2, %v612_v27, -inf  ;;  %v1248_v35 = vpop.f32.mrb[3].mxu1  ;;  %v624_v36 = vsel %vm620_vm2, %v613_v29, -inf }
  0xf0   : > { %622 = vmax.xlane.f32.xlu0 %v621_v34 }
  0xf4   : > { %625 = vmax.xlane.f32.xlu0 %v624_v36  ;;  %v376_v37 = vpop.f32.mrb[4].mxu0  ;;  %v422_v38 = vpop.f32.mrb[4].mxu1 }
  0xf5   : > { %v614_v39 = vmul.f32 0.17677669, %v376_v37  ;;  %v1253_v40 = vpop.f32.mrb[5].mxu0  ;;  %v615_v41 = vmul.f32 0.17677669, %v422_v38  ;;  %v1259_v42 = vpop.f32.mrb[5].mxu1 }
  0xf6   : > { %v379_v43 = vpop.f32.mrb[6].mxu0  ;;  %v425_v44 = vpop.f32.mrb[6].mxu1 }
  0xf7   : > { %v1254_v45 = vpop.f32.mrb[7].mxu0  ;;  %v627_v46 = vsel %vm620_vm2, %v614_v39, -inf  ;;  %v1260_v47 = vpop.f32.mrb[7].mxu1  ;;  %v630_v48 = vsel %vm620_vm2, %v615_v41, -inf }
  0xf8   : > { %628 = vmax.xlane.f32.xlu1 %v627_v46 }
  0xfc   : > { %v514_v49 = vpop.f32.mrb[8].mxu1  ;;  %631 = vmax.xlane.f32.xlu1 %v630_v48  ;;  %v468_v50 = vpop.f32.mrb[8].mxu0 }
  0xfd   : > { %v617_v51 = vmul.f32 0.17677669, %v514_v49  ;;  %v616_v52 = vmul.f32 0.17677669, %v468_v50  ;;  %v1265_v53 = vpop.f32.mrb[9].mxu0  ;;  %v1271_v54 = vpop.f32.mrb[9].mxu1 }
  0xfe   : > { %v517_v55 = vpop.f32.mrb[10].mxu1  ;;  %v471_v56 = vpop.f32.mrb[10].mxu0  ;;  %v235_v50 = vld [vmem:[%s210_s24] sm:$0xf]  ;;  %v237_v54 = vld [vmem:[%s210_s24 + $0x8] sm:$0xf] }
  0xff   : > { %v636_v57 = vsel %vm620_vm2, %v617_v51, -inf  ;;  %v633_v58 = vsel %vm620_vm2, %v616_v52, -inf  ;;  %v1266_v59 = vpop.f32.mrb[11].mxu0  ;;  %v1272_v60 = vpop.f32.mrb[11].mxu1  ;;  %v814_v55 = vsel %vm720_vm3, %v237_v54, 0 }
 0x100   : > { %637 = vmax.xlane.f32.xlu1 %v636_v57  ;;  %634 = vmax.xlane.f32.xlu0 %v633_v58  ;;  %v238_v56 = vld [vmem:[%s210_s24 + $0xc] sm:$0xf]  ;;  %v239_v58 = vld [vmem:[%s210_s24 + $0x10] sm:$0xf]  ;;  %v240_v60 = vld [vmem:[%s210_s24 + $0x14] sm:$0xf] }
 0x101   : > { %v860_v57 = vsel %vm720_vm3, %v238_v56, 0  ;;  %v906_v59 = vsel %vm720_vm3, %v239_v58, 0 }
 0x104   : > { %v560_v61 = vpop.f32.mrb[12].mxu0  ;;  %v606_v62 = vpop.f32.mrb[12].mxu1 }
 0x105   : > { %v618_v63 = vmul.f32 0.17677669, %v560_v61  ;;  %v619_v1 = vmul.f32 0.17677669, %v606_v62  ;;  %v1277_v2 = vpop.f32.mrb[13].mxu0  ;;  %v1283_v3 = vpop.f32.mrb[13].mxu1 }
 0x106   : > { %v609_v4 = vpop.f32.mrb[14].mxu1  ;;  %v563_v5 = vpop.f32.mrb[14].mxu0  ;;  %v952_v61 = vsel %vm720_vm3, %v240_v60, 0  ;;  %v241_v62 = vld [vmem:[%s210_s24 + $0x18] sm:$0xf] }
 0x107   : > { %v642_v6 = vsel %vm620_vm2, %v619_v1, -inf  ;;  %v639_v7 = vsel %vm620_vm2, %v618_v63, -inf  ;;  %v1278_v8 = vpop.f32.mrb[15].mxu0  ;;  %v1284_v9 = vpop.f32.mrb[15].mxu1 }
 0x108   : > { %643 = vmax.xlane.f32.xlu1 %v642_v6  ;;  %640 = vmax.xlane.f32.xlu0 %v639_v7 }
 0x17d   : > { %v623_v10 = vpop.xlane.xlu0 %622 }
 0x17e   : > { %v645_v11 = vsub.f32 %v612_v27, %v623_v10 }
 0x180   : > { %v653_v12 = vmul.f32 1.442695, %v645_v11 }
 0x181   : > { %v626_v13 = vpop.xlane.xlu0 %625 }
 0x182   : > { %1343 = vpow2.f32 %v653_v12  ;;  %v646_v14 = vsub.f32 %v613_v29, %v626_v13 }
 0x184   : > { %v655_v15 = vmul.f32 1.442695, %v646_v14 }
 0x185   : > { %v629_v16 = vpop.xlane.xlu1 %628 }
 0x186   : > { %1345 = vpow2.f32 %v655_v15  ;;  %v647_v17 = vsub.f32 %v614_v39, %v629_v16 }
 0x188   : > { %v657_v18 = vmul.f32 1.442695, %v647_v17 }
 0x189   : > { %v632_v19 = vpop.xlane.xlu1 %631 }
 0x18a   : > { %1347 = vpow2.f32 %v657_v18  ;;  %v648_v20 = vsub.f32 %v615_v41, %v632_v19 }
 0x18c   : > { %v1500_v21 = vpop.eup %1343  ;;  %v659_v22 = vmul.f32 1.442695, %v648_v20 }
 0x18d   : > { %v638_v23 = vpop.xlane.xlu1 %637  ;;  %v635_v24 = vpop.xlane.xlu0 %634  ;;  %v669_v25 = vsel %vm620_vm2, %v1500_v21, 0.0 }
 0x18e   : > { %1349 = vpow2.f32 %v659_v22  ;;  %v650_v26 = vsub.f32 %v617_v51, %v638_v23  ;;  %v649_v27 = vsub.f32 %v616_v52, %v635_v24  ;;  %670 = vadd.xlane.f32.xlu0 %v669_v25  ;;  %v722_v51 = vsel %vm720_vm3, %v235_v50, 0  ;;  %v236_v52 = vld [vmem:[%s210_s24 + $0x4] sm:$0xf] }
 0x18f   : > { %1286 = vmatpush3.bf16.msra.mxu0 %v722_v51  ;;  %v768_v53 = vsel %vm720_vm3, %v236_v52, 0 }
 0x190   : > { %v1504_v28 = vpop.eup %1345  ;;  %v663_v29 = vmul.f32 1.442695, %v650_v26  ;;  %v661_v30 = vmul.f32 1.442695, %v649_v27  ;;  %1297 = vmatprep.subr.bf16.mxu0 %v1383_v0  ;;  %1292 = vmatpush3.bf16.msra.mxu1 %v768_v53 }
 0x191   : > { %v672_v31 = vsel %vm620_vm2, %v1504_v28, 0.0  ;;  %1303 = vmatprep.subr.bf16.mxu1 %v1383_v0 }
 0x192   : > { %1351 = vpow2.f32 %v663_v29  ;;  %673 = vadd.xlane.f32.xlu1 %v672_v31 }
 0x193   : > { %1353 = vpow2.f32 %v661_v30 }
 0x194   : > { %v1508_v32 = vpop.eup %1347 }
 0x195   : > { %v644_v33 = vpop.xlane.xlu1 %643  ;;  %v641_v34 = vpop.xlane.xlu0 %640  ;;  %v675_v35 = vsel %vm620_vm2, %v1508_v32, 0.0 }
 0x196   : > { %v652_v36 = vsub.f32 %v619_v1, %v644_v33  ;;  %v651_v37 = vsub.f32 %v618_v63, %v641_v34  ;;  %676 = vadd.xlane.f32.xlu0 %v675_v35  ;;  %v998_v63 = vsel %vm720_vm3, %v241_v62, 0  ;;  %v242_v1 = vld [vmem:[%s210_s24 + $0x1c] sm:$0xf] }
 0x197   : > { %v1044_v2 = vsel %vm720_vm3, %v242_v1, 0 }
 0x198   : > { %v1512_v38 = vpop.eup %1349  ;;  %v667_v39 = vmul.f32 1.442695, %v652_v36  ;;  %v665_v40 = vmul.f32 1.442695, %v651_v37 }
 0x199   : > { %v678_v41 = vsel %vm620_vm2, %v1512_v38, 0.0 }
 0x19a   : > { %1355 = vpow2.f32 %v667_v39  ;;  %679 = vadd.xlane.f32.xlu1 %v678_v41 }
 0x19b   : > { %1357 = vpow2.f32 %v665_v40 }
 0x19c   : > { %v1516_v42 = vpop.eup %1351 }
 0x19d   : > { %v1518_v43 = vpop.eup %1353  ;;  %v684_v44 = vsel %vm620_vm2, %v1516_v42, 0.0 }
 0x19e   : > { %685 = vadd.xlane.f32.xlu1 %v684_v44  ;;  %v681_v45 = vsel %vm620_vm2, %v1518_v43, 0.0 }
 0x19f   : > { %682 = vadd.xlane.f32.xlu0 %v681_v45 }
 0x1a4   : > { %v1524_v46 = vpop.eup %1355 }
 0x1a5   : > { %v1526_v47 = vpop.eup %1357  ;;  %v690_v48 = vsel %vm620_vm2, %v1524_v46, 0.0 }
 0x1a6   : > { %691 = vadd.xlane.f32.xlu1 %v690_v48  ;;  %v687_v49 = vsel %vm620_vm2, %v1526_v47, 0.0 }
 0x1a7   : > { %688 = vadd.xlane.f32.xlu0 %v687_v49 }
 0x21b   : > { %v671_v3 = vpop.xlane.xlu0 %670 }
 0x21c   : > { %1359 = vrcp.f32 %v671_v3 }
 0x21f   : > { %v674_v4 = vpop.xlane.xlu1 %673 }
 0x220   : > { %1361 = vrcp.f32 %v674_v4 }
 0x223   : > { %v677_v5 = vpop.xlane.xlu0 %676 }
 0x224   : > { %1363 = vrcp.f32 %v677_v5 }
 0x226   : > { %v1360_v6 = vpop.eup %1359 }
 0x227   : > { %v701_v7 = vmul.f32 %v1360_v6, %v1500_v21  ;;  %v680_v8 = vpop.xlane.xlu1 %679 }
 0x228   : > { %1365 = vrcp.f32 %v680_v8 }
 0x229   : > { %v709_v9 = vpack.c.bf16 %v701_v7, %v701_v7 }
 0x22a   : > { %v1362_v10 = vpop.eup %1361 }
 0x22b   : > { %v702_v11 = vmul.f32 %v1362_v10, %v1504_v28  ;;  %v686_v12 = vpop.xlane.xlu1 %685  ;;  %1288 = vmatmul.mubr.msk.bf16.vlgmr.msra.gmra.mrb[16].mxu0 %vm620_vm2, %v709_v9 }
 0x22c   : > { %1367 = vrcp.f32 %v686_v12  ;;  %v683_v13 = vpop.xlane.xlu0 %682  ;;  %1298 = vmatpush3.bf16.msra.mxu0 %v814_v55  ;;  %1299 = vmatprep.mubr.msk.bf16.mxu0 %vm1384_vm0, %v1383_v0 }
 0x22d   : > { %1369 = vrcp.f32 %v683_v13  ;;  %v710_v14 = vpack.c.bf16 %v702_v11, %v702_v11  ;;  %1309 = vmatprep.subr.bf16.mxu0 %v1383_v0 }
 0x22e   : > { %v1364_v15 = vpop.eup %1363 }
 0x22f   : > { %v703_v16 = vmul.f32 %v1364_v15, %v1508_v32  ;;  %1294 = vmatmul.mubr.msk.bf16.vlgmr.msra.gmra.mrb[16].mxu1 %vm620_vm2, %v710_v14 }
 0x230   : > { %1304 = vmatpush3.bf16.msra.mxu1 %v860_v57  ;;  %1305 = vmatprep.mubr.msk.bf16.mxu1 %vm1384_vm0, %v1383_v0 }
 0x231   : > { %v711_v17 = vpack.c.bf16 %v703_v16, %v703_v16  ;;  %1315 = vmatprep.subr.bf16.mxu1 %v1383_v0 }
 0x232   : > { %v1366_v18 = vpop.eup %1365 }
 0x233   : > { %v704_v19 = vmul.f32 %v1366_v18, %v1512_v38  ;;  %v692_v20 = vpop.xlane.xlu1 %691  ;;  %1300 = vmatmul.mubr.msk.bf16.vlgmr.msra.gmra.mrb[20].mxu0 %vm620_vm2, %v711_v17 }
 0x234   : > { %1371 = vrcp.f32 %v692_v20  ;;  %v689_v21 = vpop.xlane.xlu0 %688  ;;  %1310 = vmatpush3.bf16.msra.mxu0 %v906_v59  ;;  %1311 = vmatprep.mubr.msk.bf16.mxu0 %vm1384_vm0, %v1383_v0 }
 0x235   : > { %1373 = vrcp.f32 %v689_v21  ;;  %v712_v22 = vpack.c.bf16 %v704_v19, %v704_v19  ;;  %1321 = vmatprep.subr.bf16.mxu0 %v1383_v0 }
 0x236   : > { %v1368_v23 = vpop.eup %1367 }
 0x237   : > { %v1370_v24 = vpop.eup %1369  ;;  %1306 = vmatmul.mubr.msk.bf16.vlgmr.msra.gmra.mrb[20].mxu1 %vm620_vm2, %v712_v22  ;;  %v706_v26 = vmul.f32 %v1368_v23, %v1516_v42 }
 0x238   : > { %v705_v25 = vmul.f32 %v1370_v24, %v1518_v43  ;;  %1316 = vmatpush3.bf16.msra.mxu1 %v952_v61  ;;  %1317 = vmatprep.mubr.msk.bf16.mxu1 %vm1384_vm0, %v1383_v0 }
 0x239   : > { %1327 = vmatprep.subr.bf16.mxu1 %v1383_v0  ;;  %v714_v28 = vpack.c.bf16 %v706_v26, %v706_v26 }
 0x23a   : > { %v713_v27 = vpack.c.bf16 %v705_v25, %v705_v25 }
 0x23c   : > { %1312 = vmatmul.mubr.msk.bf16.vlgmr.msra.gmra.mrb[24].mxu0 %vm620_vm2, %v713_v27 }
 0x23d   : > { %1322 = vmatpush3.bf16.msra.mxu0 %v998_v63  ;;  %1323 = vmatprep.mubr.msk.bf16.mxu0 %vm1384_vm0, %v1383_v0 }
 0x23e   : > { %v1372_v29 = vpop.eup %1371 }
 0x23f   : > { %v1374_v30 = vpop.eup %1373  ;;  %1318 = vmatmul.mubr.msk.bf16.vlgmr.msra.gmra.mrb[24].mxu1 %vm620_vm2, %v714_v28  ;;  %v708_v32 = vmul.f32 %v1372_v29, %v1524_v46 }
 0x240   : > { %v707_v31 = vmul.f32 %v1374_v30, %v1526_v47  ;;  %1328 = vmatpush3.bf16.msra.mxu1 %v1044_v2  ;;  %1329 = vmatprep.mubr.msk.bf16.mxu1 %vm1384_vm0, %v1383_v0 }
 0x241   : > { %v716_v34 = vpack.c.bf16 %v708_v32, %v708_v32 }
 0x242   : > { %v715_v33 = vpack.c.bf16 %v707_v31, %v707_v31 }
 0x244   : > { %1324 = vmatmul.mubr.msk.bf16.vlgmr.msra.gmra.mrb[28].mxu0 %vm620_vm2, %v715_v33 }
 0x247   : > { %1330 = vmatmul.mubr.msk.bf16.vlgmr.msra.gmra.mrb[28].mxu1 %vm620_vm2, %v716_v34 }
 0x2fe   : > { %v758_v35 = vpop.f32.mrb[16].mxu0 }
 0x2ff   : > { %1086 = vst.msk [vmem:[%s1582_s28] sm:$0xff] %vm243_vm1, %v758_v35  ;;  %v1289_v0 = vpop.f32.mrb[17].mxu0 }
 0x300   : > { %v761_v36 = vpop.f32.mrb[18].mxu0 }
 0x301   : > { %v1290_v37 = vpop.f32.mrb[19].mxu0 }
 0x302   : > { %v804_v38 = vpop.f32.mrb[16].mxu1 }
 0x303   : > { %1087 = vst.msk [vmem:[%s1582_s28 + $0x8] sm:$0xff] %vm243_vm1, %v804_v38  ;;  %v1295_v39 = vpop.f32.mrb[17].mxu1 }
 0x304   : > { %v807_v40 = vpop.f32.mrb[18].mxu1 }
 0x305   : > { %v1296_v41 = vpop.f32.mrb[19].mxu1 }
 0x306   : > { %v850_v42 = vpop.f32.mrb[20].mxu0 }
 0x307   : > { %1088 = vst.msk [vmem:[%s1582_s28 + $0x10] sm:$0xff] %vm243_vm1, %v850_v42  ;;  %v1301_v43 = vpop.f32.mrb[21].mxu0 }
 0x308   : > { %v853_v44 = vpop.f32.mrb[22].mxu0 }
 0x309   : > { %v1302_v45 = vpop.f32.mrb[23].mxu0 }
 0x30a   : > { %v896_v46 = vpop.f32.mrb[20].mxu1 }
 0x30b   : > { %1089 = vst.msk [vmem:[%s1582_s28 + $0x18] sm:$0xff] %vm243_vm1, %v896_v46  ;;  %v1307_v47 = vpop.f32.mrb[21].mxu1 }
 0x30c   : > { %v899_v48 = vpop.f32.mrb[22].mxu1 }
 0x30d   : > { %v1308_v49 = vpop.f32.mrb[23].mxu1 }
 0x30f   : > { %v942_v50 = vpop.f32.mrb[24].mxu0 }
 0x310   : > { %1090 = vst.msk [vmem:[%s1582_s28 + $0x20] sm:$0xff] %vm243_vm1, %v942_v50  ;;  %v1313_v51 = vpop.f32.mrb[25].mxu0 }
 0x311   : > { %v945_v52 = vpop.f32.mrb[26].mxu0 }
 0x312   : > { %v1314_v53 = vpop.f32.mrb[27].mxu0  ;;  %v988_v54 = vpop.f32.mrb[24].mxu1 }
 0x313   : > { %1091 = vst.msk [vmem:[%s1582_s28 + $0x28] sm:$0xff] %vm243_vm1, %v988_v54  ;;  %v1319_v55 = vpop.f32.mrb[25].mxu1 }
 0x314   : > { %v991_v56 = vpop.f32.mrb[26].mxu1 }
 0x315   : > { %v1320_v57 = vpop.f32.mrb[27].mxu1 }
 0x317   : > { %v1034_v58 = vpop.f32.mrb[28].mxu0 }
 0x318   : > { %1092 = vst.msk [vmem:[%s1582_s28 + $0x30] sm:$0xff] %vm243_vm1, %v1034_v58  ;;  %v1325_v59 = vpop.f32.mrb[29].mxu0 }
 0x319   : > { %v1037_v60 = vpop.f32.mrb[30].mxu0 }
 0x31a   : > { %v1326_v61 = vpop.f32.mrb[31].mxu0  ;;  %v1080_v62 = vpop.f32.mrb[28].mxu1 }
 0x31b   : > { %1093 = vst.msk [vmem:[%s1582_s28 + $0x38] sm:$0xff] %vm243_vm1, %v1080_v62  ;;  %v1331_v63 = vpop.f32.mrb[29].mxu1 }
 0x31c   : > { %v1083_v1 = vpop.f32.mrb[30].mxu1 }
 0x31d   : > { %v1332_v2 = vpop.f32.mrb[31].mxu1 }
 0x31e PF: > { %s13_s12 = sadd.s32 1, %s1381_s12  }
 0x31f   : > { %p10_p4 = scmp.ge.s32.totalorder %s13_s12, 4  }
 0x321   :  { %12 = sbr.rel (!%p10_p4) target bundleno = 1 (0x1), region = 68 }

// kernel: model_forward.59
= control target key start
LH: loop header
LB: loop body
LE: loop exit
PB: predicated region body
PF: predicated region fallthrough
CT: control target
= control target key end

     0   :  { %s181_s0 = inlined_call_operand.vmem [shape: f32[32,128], index: 0, kind: input, shape index: {}]   ;;  %s182_s1 = inlined_call_operand.vmem [shape: f32[32,128], index: 1, kind: input, shape index: {}]   ;;  %s183_s2 = inlined_call_operand.vmem [shape: f32[1,128], index: 2, kind: input, shape index: {}]   ;;  %s184_s3 = inlined_call_operand.vmem [shape: f32[1,128], index: 3, kind: input, shape index: {}]   ;;  %s185_s4 = inlined_call_operand.vmem [shape: f32[32,128], index: 4, kind: output, shape index: {}]  }
   0x1   :  { %v17_v0 = vld [vmem:[%s181_s0] sm:$0xff]  ;;  %v19_v2 = vld [vmem:[%s181_s0 + $0x10] sm:$0xff]  ;;  %v18_v5 = vld [vmem:[%s181_s0 + $0x8] sm:$0xff] }
   0x2   :  { %v21_v1 = vld [vmem:[%s182_s1] sm:$0xff]  ;;  %v23_v4 = vld [vmem:[%s182_s1 + $0x10] sm:$0xff]  ;;  %v22_v6 = vld [vmem:[%s182_s1 + $0x8] sm:$0xff] }
   0x3   :  { %v25_v3 = vadd.f32 %v21_v1, %v17_v0  ;;  %v27_v7 = vadd.f32 %v23_v4, %v19_v2  ;;  %v20_v8 = vld [vmem:[%s181_s0 + $0x18] sm:$0xff]  ;;  %v26_v10 = vadd.f32 %v22_v6, %v18_v5  ;;  %v104_v41 = vld [vmem:[%s183_s2] ss:$0 sm:$0xff] }
   0x4   :  { %v24_v9 = vld [vmem:[%s182_s1 + $0x18] sm:$0xff]  ;;  %v105_v43 = vld [vmem:[%s184_s3] ss:$0 sm:$0xff] }
   0x5   :  { %31 = vadd.xlane.f32.xlu0 %v25_v3  ;;  %35 = vadd.xlane.f32.xlu1 %v27_v7  ;;  %v28_v11 = vadd.f32 %v24_v9, %v20_v8 }
   0x9   :  { %33 = vadd.xlane.f32.xlu0 %v26_v10  ;;  %37 = vadd.xlane.f32.xlu1 %v28_v11 }
  0x92   :  { %v32_v12 = vpop.xlane.xlu0 %31  ;;  %v36_v14 = vpop.xlane.xlu1 %35 }
  0x93   :  { %v40_v13 = vmul.f32 0.0078125, %v32_v12  ;;  %v42_v15 = vmul.f32 0.0078125, %v36_v14 }
  0x95   :  { %v44_v16 = vsub.f32 %v25_v3, %v40_v13  ;;  %v46_v17 = vsub.f32 %v27_v7, %v42_v15 }
  0x96   :  { %v34_v18 = vpop.xlane.xlu0 %33  ;;  %v38_v21 = vpop.xlane.xlu1 %37 }
  0x97   :  { %v41_v19 = vmul.f32 0.0078125, %v34_v18  ;;  %v48_v20 = vmul.f32 %v44_v16, %v44_v16  ;;  %v43_v22 = vmul.f32 0.0078125, %v38_v21  ;;  %v50_v24 = vmul.f32 %v46_v17, %v46_v17 }
  0x99   :  { %v45_v23 = vsub.f32 %v26_v10, %v41_v19  ;;  %52 = vadd.xlane.f32.xlu0 %v48_v20  ;;  %v47_v25 = vsub.f32 %v28_v11, %v43_v22 }
  0x9b   :  { %v49_v26 = vmul.f32 %v45_v23, %v45_v23  ;;  %v51_v27 = vmul.f32 %v47_v25, %v47_v25 }
  0x9d   :  { %56 = vadd.xlane.f32.xlu0 %v50_v24  ;;  %54 = vadd.xlane.f32.xlu1 %v49_v26 }
  0xa1   :  { %58 = vadd.xlane.f32.xlu1 %v51_v27 }
 0x126   :  { %v53_v28 = vpop.xlane.xlu0 %52 }
 0x127   :  { %v60_v29 = vmul.f32 0.0078125, %v53_v28 }
 0x129   :  { %v64_v30 = vadd.f32 1e-05, %v60_v29 }
 0x12a   :  { %v55_v31 = vpop.xlane.xlu1 %54  ;;  %v57_v32 = vpop.xlane.xlu0 %56 }
 0x12b   :  { %106 = vrsqrt.f32 %v64_v30  ;;  %v61_v33 = vmul.f32 0.0078125, %v55_v31  ;;  %v62_v34 = vmul.f32 0.0078125, %v57_v32 }
 0x12d   :  { %v65_v35 = vadd.f32 1e-05, %v61_v33  ;;  %v66_v36 = vadd.f32 1e-05, %v62_v34 }
 0x12e   :  { %v59_v37 = vpop.xlane.xlu1 %58 }
 0x12f   :  { %108 = vrsqrt.f32 %v65_v35  ;;  %v63_v38 = vmul.f32 0.0078125, %v59_v37 }
 0x130   :  { %110 = vrsqrt.f32 %v66_v36 }
 0x131   :  { %v67_v39 = vadd.f32 1e-05, %v63_v38 }
 0x133   :  { %112 = vrsqrt.f32 %v67_v39 }
 0x135   :  { %v107_v40 = vpop.eup %106 }
 0x136   :  { %v72_v42 = vmul.f32 %v107_v40, %v44_v16 }
 0x138   :  { %v82_v44 = vmul.f32 %v104_v41, %v72_v42 }
 0x139   :  { %v109_v45 = vpop.eup %108 }
 0x13a   :  { %v111_v46 = vpop.eup %110  ;;  %v92_v47 = vadd.f32 %v105_v43, %v82_v44  ;;  %v73_v48 = vmul.f32 %v109_v45, %v45_v23 }
 0x13b   :  { %v74_v49 = vmul.f32 %v111_v46, %v46_v17 }
 0x13c   :  { %96 = vst [vmem:[%s185_s4] sm:$0xff] %v92_v47  ;;  %v83_v50 = vmul.f32 %v104_v41, %v73_v48 }
 0x13d   :  { %v113_v51 = vpop.eup %112  ;;  %v84_v52 = vmul.f32 %v104_v41, %v74_v49 }
 0x13e   :  { %v93_v53 = vadd.f32 %v105_v43, %v83_v50  ;;  %v75_v54 = vmul.f32 %v113_v51, %v47_v25 }
 0x13f   :  { %v94_v55 = vadd.f32 %v105_v43, %v84_v52 }
 0x140   :  { %97 = vst [vmem:[%s185_s4 + $0x8] sm:$0xff] %v93_v53  ;;  %v85_v56 = vmul.f32 %v104_v41, %v75_v54 }
 0x141   :  { %98 = vst [vmem:[%s185_s4 + $0x10] sm:$0xff] %v94_v55 }
 0x142   :  { %v95_v57 = vadd.f32 %v105_v43, %v85_v56 }
 0x144   :  { %99 = vst [vmem:[%s185_s4 + $0x18] sm:$0xff] %v95_v57 }

// kernel: model_forward.55
= control target key start
LH: loop header
LB: loop body
LE: loop exit
PB: predicated region body
PF: predicated region fallthrough
CT: control target
= control target key end

     0   :  { %s153_s0 = inlined_call_operand.vmem [shape: f32[32,128], index: 0, kind: input, shape index: {}]   ;;  %s154_s1 = inlined_call_operand.vmem [shape: f32[1,128], index: 1, kind: input, shape index: {}]   ;;  %s155_s2 = inlined_call_operand.vmem [shape: f32[1,128], index: 2, kind: input, shape index: {}]   ;;  %s156_s3 = inlined_call_operand.vmem [shape: f32[32,128], index: 3, kind: output, shape index: {}]  }
   0x1   :  { %v14_v0 = vld [vmem:[%s153_s0] sm:$0xff]  ;;  %v16_v1 = vld [vmem:[%s153_s0 + $0x10] sm:$0xff]  ;;  %v15_v2 = vld [vmem:[%s153_s0 + $0x8] sm:$0xff] }
   0x2   :  { %20 = vadd.xlane.f32.xlu0 %v14_v0  ;;  %24 = vadd.xlane.f32.xlu1 %v16_v1  ;;  %v17_v3 = vld [vmem:[%s153_s0 + $0x18] sm:$0xff]  ;;  %v93_v33 = vld [vmem:[%s154_s1] ss:$0 sm:$0xff] }
   0x3   :  { %v94_v35 = vld [vmem:[%s155_s2] ss:$0 sm:$0xff] }
   0x6   :  { %22 = vadd.xlane.f32.xlu0 %v15_v2  ;;  %26 = vadd.xlane.f32.xlu1 %v17_v3 }
  0x8f   :  { %v21_v4 = vpop.xlane.xlu0 %20  ;;  %v25_v5 = vpop.xlane.xlu1 %24 }
  0x90   :  { %v29_v6 = vmul.f32 0.0078125, %v21_v4  ;;  %v31_v7 = vmul.f32 0.0078125, %v25_v5 }
  0x92   :  { %v33_v8 = vsub.f32 %v14_v0, %v29_v6  ;;  %v35_v9 = vsub.f32 %v16_v1, %v31_v7 }
  0x93   :  { %v23_v10 = vpop.xlane.xlu0 %22  ;;  %v27_v11 = vpop.xlane.xlu1 %26 }
  0x94   :  { %v30_v12 = vmul.f32 0.0078125, %v23_v10  ;;  %v37_v13 = vmul.f32 %v33_v8, %v33_v8  ;;  %v32_v14 = vmul.f32 0.0078125, %v27_v11  ;;  %v39_v17 = vmul.f32 %v35_v9, %v35_v9 }
  0x96   :  { %v34_v15 = vsub.f32 %v15_v2, %v30_v12  ;;  %41 = vadd.xlane.f32.xlu0 %v37_v13  ;;  %v36_v16 = vsub.f32 %v17_v3, %v32_v14 }
  0x98   :  { %v38_v18 = vmul.f32 %v34_v15, %v34_v15  ;;  %v40_v19 = vmul.f32 %v36_v16, %v36_v16 }
  0x9a   :  { %45 = vadd.xlane.f32.xlu0 %v39_v17  ;;  %43 = vadd.xlane.f32.xlu1 %v38_v18 }
  0x9e   :  { %47 = vadd.xlane.f32.xlu1 %v40_v19 }
 0x123   :  { %v42_v20 = vpop.xlane.xlu0 %41 }
 0x124   :  { %v49_v21 = vmul.f32 0.0078125, %v42_v20 }
 0x126   :  { %v53_v22 = vadd.f32 1e-05, %v49_v21 }
 0x127   :  { %v44_v23 = vpop.xlane.xlu1 %43  ;;  %v46_v24 = vpop.xlane.xlu0 %45 }
 0x128   :  { %95 = vrsqrt.f32 %v53_v22  ;;  %v50_v25 = vmul.f32 0.0078125, %v44_v23  ;;  %v51_v26 = vmul.f32 0.0078125, %v46_v24 }
 0x12a   :  { %v54_v27 = vadd.f32 1e-05, %v50_v25  ;;  %v55_v28 = vadd.f32 1e-05, %v51_v26 }
 0x12b   :  { %v48_v29 = vpop.xlane.xlu1 %47 }
 0x12c   :  { %97 = vrsqrt.f32 %v54_v27  ;;  %v52_v30 = vmul.f32 0.0078125, %v48_v29 }
 0x12d   :  { %99 = vrsqrt.f32 %v55_v28 }
 0x12e   :  { %v56_v31 = vadd.f32 1e-05, %v52_v30 }
 0x130   :  { %101 = vrsqrt.f32 %v56_v31 }
 0x132   :  { %v96_v32 = vpop.eup %95 }
 0x133   :  { %v61_v34 = vmul.f32 %v96_v32, %v33_v8 }
 0x135   :  { %v71_v36 = vmul.f32 %v93_v33, %v61_v34 }
 0x136   :  { %v98_v37 = vpop.eup %97 }
 0x137   :  { %v100_v38 = vpop.eup %99  ;;  %v81_v39 = vadd.f32 %v94_v35, %v71_v36  ;;  %v62_v40 = vmul.f32 %v98_v37, %v34_v15 }
 0x138   :  { %v63_v41 = vmul.f32 %v100_v38, %v35_v9 }
 0x139   :  { %85 = vst [vmem:[%s156_s3] sm:$0xff] %v81_v39  ;;  %v72_v42 = vmul.f32 %v93_v33, %v62_v40 }
 0x13a   :  { %v102_v43 = vpop.eup %101  ;;  %v73_v44 = vmul.f32 %v93_v33, %v63_v41 }
 0x13b   :  { %v82_v45 = vadd.f32 %v94_v35, %v72_v42  ;;  %v64_v46 = vmul.f32 %v102_v43, %v36_v16 }
 0x13c   :  { %v83_v47 = vadd.f32 %v94_v35, %v73_v44 }
 0x13d   :  { %86 = vst [vmem:[%s156_s3 + $0x8] sm:$0xff] %v82_v45  ;;  %v74_v48 = vmul.f32 %v93_v33, %v64_v46 }
 0x13e   :  { %87 = vst [vmem:[%s156_s3 + $0x10] sm:$0xff] %v83_v47 }
 0x13f   :  { %v84_v49 = vadd.f32 %v94_v35, %v74_v48 }
 0x141   :  { %88 = vst [vmem:[%s156_s3 + $0x18] sm:$0xff] %v84_v49 }

// kernel: model_forward.61
= control target key start
LH: loop header
LB: loop body
LE: loop exit
PB: predicated region body
PF: predicated region fallthrough
CT: control target
= control target key end

     0   :  { %v320_v1 = vmov 0   ;;  %v229_v19 = vlaneseq  ;;  %s422_s1 = inlined_call_operand.vmem [shape: bf16[128,256], index: 1, kind: input, shape index: {}]   ;;  %s423_s0 = inlined_call_operand.vmem [shape: bf16[32,128], index: 0, kind: input, shape index: {}]   ;;  %s424_s2 = inlined_call_operand.vmem [shape: f32[1,256], index: 2, kind: input, shape index: {}]   ;;  %s425_s3 = inlined_call_operand.vmem [shape: f32[32,256], index: 3, kind: output, shape index: {}]  }
   0x1   :  { %v294_v0 = vld [vmem:[%s422_s1 + $0x4] ss:$8 sps:$4 sm:$0xff]   ;;  %179 = vmatprep.mubr.bf16.mxu0 %v320_v1  ;;  %189 = vmatprep.mubr.bf16.mxu1 %v320_v1  ;;  %v296_v2 = vld [vmem:[%s422_s1] ss:$8 sps:$4 sm:$0xff]   ;;  %v297_v3 = vld [vmem:[%s422_s1 + $0x14] ss:$8 sps:$4 sm:$0xff]  }
   0x2   :  { %147 = vmatprep.subr.bf16.mxu0 %v294_v0  ;;  %277 = vmatprep.subr.bf16.mxu1 %v294_v0  ;;  %v299_v4 = vld [vmem:[%s422_s1 + $0x10] ss:$8 sps:$4 sm:$0xff]   ;;  %v300_v5 = vld [vmem:[%s422_s1 + $0x24] ss:$8 sps:$4 sm:$0xff]   ;;  %v302_v6 = vld [vmem:[%s422_s1 + $0x20] ss:$8 sps:$4 sm:$0xff]  }
   0x3   :  { %148 = vmatpush1.bf16.msra.mxu0 %v296_v2  ;;  %285 = vmatpush1.bf16.msra.mxu1 %v296_v2  ;;  %v303_v7 = vld [vmem:[%s422_s1 + $0x34] ss:$8 sps:$4 sm:$0xff]   ;;  %v305_v8 = vld [vmem:[%s422_s1 + $0x30] ss:$8 sps:$4 sm:$0xff]   ;;  %v306_v9 = vld [vmem:[%s422_s1 + $0x44] ss:$8 sps:$4 sm:$0xff]  }
   0x4   :  { %149 = vmatprep.subr.bf16.mxu0 %v297_v3  ;;  %278 = vmatprep.subr.bf16.mxu1 %v297_v3  ;;  %v308_v10 = vld [vmem:[%s422_s1 + $0x40] ss:$8 sps:$4 sm:$0xff]   ;;  %v309_v11 = vld [vmem:[%s422_s1 + $0x54] ss:$8 sps:$4 sm:$0xff]   ;;  %v311_v12 = vld [vmem:[%s422_s1 + $0x50] ss:$8 sps:$4 sm:$0xff]  }
   0x5   :  { %v312_v13 = vld [vmem:[%s422_s1 + $0x64] ss:$8 sps:$4 sm:$0xff]   ;;  %v314_v14 = vld [vmem:[%s422_s1 + $0x60] ss:$8 sps:$4 sm:$0xff]   ;;  %v315_v15 = vld [vmem:[%s422_s1 + $0x74] ss:$8 sps:$4 sm:$0xff]  }
   0x6   :  { %v317_v16 = vld [vmem:[%s422_s1 + $0x70] ss:$8 sps:$4 sm:$0xff]   ;;  %v318_v17 = vld [vmem:[%s423_s0] sm:$0xff]   ;;  %v319_v18 = vld [vmem:[%s423_s0 + $0x8] sm:$0xff]   ;;  %v230_v20 = vshrl.u32 %v229_v19, 7 }
   0x7   :  { %150 = vmatpush1.bf16.msra.mxu0 %v299_v4  ;;  %286 = vmatpush1.bf16.msra.mxu1 %v299_v4  ;;  %v227_v22 = vld [vmem:[%s424_s2] sm:$0x3] }
   0x8   :  { %151 = vmatprep.subr.bf16.mxu0 %v300_v5  ;;  %279 = vmatprep.subr.bf16.mxu1 %v300_v5  ;;  %v231_v21 = vsub.s32 0, %v230_v20  ;;  %v235_v23 = vsub.s32 1, %v230_v20 }
   0xa   :  { %v232_v24 = vrot.slane %v227_v22, %v231_v21  ;;  %v236_v25 = vrot.slane %v227_v22, %v235_v23 }
   0xb   :  { %152 = vmatpush1.bf16.msra.mxu0 %v302_v6  ;;  %287 = vmatpush1.bf16.msra.mxu1 %v302_v6 }
   0xc   :  { %153 = vmatprep.subr.bf16.mxu0 %v303_v7  ;;  %280 = vmatprep.subr.bf16.mxu1 %v303_v7 }
   0xf   :  { %154 = vmatpush1.bf16.msra.mxu0 %v305_v8  ;;  %288 = vmatpush1.bf16.msra.mxu1 %v305_v8 }
  0x10   :  { %155 = vmatprep.subr.bf16.mxu0 %v306_v9  ;;  %281 = vmatprep.subr.bf16.mxu1 %v306_v9 }
  0x13   :  { %156 = vmatpush1.bf16.msra.mxu0 %v308_v10  ;;  %289 = vmatpush1.bf16.msra.mxu1 %v308_v10 }
  0x14   :  { %157 = vmatprep.subr.bf16.mxu0 %v309_v11  ;;  %282 = vmatprep.subr.bf16.mxu1 %v309_v11 }
  0x17   :  { %158 = vmatpush1.bf16.msra.mxu0 %v311_v12  ;;  %290 = vmatpush1.bf16.msra.mxu1 %v311_v12 }
  0x18   :  { %159 = vmatprep.subr.bf16.mxu0 %v312_v13  ;;  %283 = vmatprep.subr.bf16.mxu1 %v312_v13 }
  0x1b   :  { %160 = vmatpush1.bf16.msra.mxu0 %v314_v14  ;;  %291 = vmatpush1.bf16.msra.mxu1 %v314_v14 }
  0x1c   :  { %161 = vmatprep.subr.bf16.mxu0 %v315_v15  ;;  %284 = vmatprep.subr.bf16.mxu1 %v315_v15 }
  0x1f   :  { %162 = vmatpush1.bf16.msra.mxu0 %v317_v16  ;;  %292 = vmatpush1.bf16.msra.mxu1 %v317_v16 }
  0x22   :  { %180 = vmatmul.mubr.bf16.vlgmr.msra.gmra.mrb[0].mxu0 %v318_v17  ;;  %190 = vmatmul.mubr.bf16.vlgmr.msra.gmra.mrb[0].mxu1 %v319_v18 }
  0xf5   :  { %v181_v26 = vpop.f32.mrb[0].mxu0  ;;  %v191_v27 = vpop.f32.mrb[0].mxu1 }
  0xf6   :  { %v239_v28 = vadd.f32 %v232_v24, %v181_v26  ;;  %v243_v29 = vadd.f32 %v232_v24, %v191_v27  ;;  %v183_v30 = vpop.f32.mrb[1].mxu0  ;;  %v193_v31 = vpop.f32.mrb[1].mxu1 }
  0xf7   :  { %v240_v32 = vadd.f32 %v236_v25, %v183_v30  ;;  %v244_v33 = vadd.f32 %v236_v25, %v193_v31  ;;  %v185_v34 = vpop.f32.mrb[2].mxu0  ;;  %v195_v35 = vpop.f32.mrb[2].mxu1 }
  0xf8   :  { %247 = vst [vmem:[%s425_s3] sm:$0xff] %v239_v28  ;;  %251 = vst [vmem:[%s425_s3 + $0x20] sm:$0xff] %v243_v29  ;;  %v241_v36 = vadd.f32 %v232_v24, %v185_v34  ;;  %v245_v37 = vadd.f32 %v232_v24, %v195_v35  ;;  %v187_v38 = vpop.f32.mrb[3].mxu0  ;;  %v197_v39 = vpop.f32.mrb[3].mxu1 }
  0xf9   :  { %248 = vst [vmem:[%s425_s3 + $0x8] sm:$0xff] %v240_v32  ;;  %252 = vst [vmem:[%s425_s3 + $0x28] sm:$0xff] %v244_v33  ;;  %v242_v40 = vadd.f32 %v236_v25, %v187_v38  ;;  %v246_v41 = vadd.f32 %v236_v25, %v197_v39 }
  0xfa   :  { %249 = vst [vmem:[%s425_s3 + $0x10] sm:$0xff] %v241_v36  ;;  %253 = vst [vmem:[%s425_s3 + $0x30] sm:$0xff] %v245_v37 }
  0xfb   :  { %250 = vst [vmem:[%s425_s3 + $0x18] sm:$0xff] %v242_v40  ;;  %254 = vst [vmem:[%s425_s3 + $0x38] sm:$0xff] %v246_v41 }

// kernel: model_forward.46
= control target key start
LH: loop header
LB: loop body
LE: loop exit
PB: predicated region body
PF: predicated region fallthrough
CT: control target
= control target key end

     0   :  { %s444_s1 = inlined_call_operand.vmem [shape: bf16[256,128], index: 1, kind: input, shape index: {}]   ;;  %s445_s0 = inlined_call_operand.vmem [shape: bf16[32,256], index: 0, kind: input, shape index: {}]   ;;  %s446_s2 = inlined_call_operand.vmem [shape: f32[1,128], index: 2, kind: input, shape index: {}]   ;;  %s447_s3 = inlined_call_operand.vmem [shape: f32[32,128], index: 3, kind: output, shape index: {}]  }
   0x1   :  { %v327_v0 = vld [vmem:[%s444_s1 + $0x40] sm:$0xff]   ;;  %v329_v2 = vld [vmem:[%s444_s1 + $0x48] sm:$0xff]   ;;  %v331_v4 = vld [vmem:[%s444_s1 + $0x50] sm:$0xff]  }
   0x2   :  { %v328_v1 = vld [vmem:[%s444_s1] sm:$0xff]   ;;  %283 = vmatprep.subr.bf16.mxu0 %v327_v0  ;;  %311 = vmatprep.subr.bf16.mxu1 %v327_v0  ;;  %v330_v3 = vld [vmem:[%s444_s1 + $0x8] sm:$0xff]   ;;  %v332_v5 = vld [vmem:[%s444_s1 + $0x10] sm:$0xff]  }
   0x3   :  { %284 = vmatpush3.bf16.msra.mxu0 %v328_v1  ;;  %319 = vmatpush3.bf16.msra.mxu1 %v328_v1  ;;  %v333_v6 = vld [vmem:[%s444_s1 + $0x58] sm:$0xff]   ;;  %v335_v8 = vld [vmem:[%s444_s1 + $0x60] sm:$0xff]   ;;  %v337_v10 = vld [vmem:[%s444_s1 + $0x68] sm:$0xff]  }
   0x4   :  { %285 = vmatprep.subr.bf16.mxu0 %v329_v2  ;;  %312 = vmatprep.subr.bf16.mxu1 %v329_v2  ;;  %v334_v7 = vld [vmem:[%s444_s1 + $0x18] sm:$0xff]   ;;  %v336_v9 = vld [vmem:[%s444_s1 + $0x20] sm:$0xff]   ;;  %v338_v13 = vld [vmem:[%s444_s1 + $0x28] sm:$0xff]  }
   0x5   :  { %v345_v11 = vld [vmem:[%s445_s0 + $0x4] ss:$8 sps:$4 sm:$0xff]   ;;  %v348_v12 = vld [vmem:[%s445_s0 + $0x14] ss:$8 sps:$4 sm:$0xff]   ;;  %v343_v18 = vld [vmem:[%s445_s0] ss:$8 sps:$4 sm:$0xff]  }
   0x6   :  { %v339_v14 = vld [vmem:[%s444_s1 + $0x70] sm:$0xff]   ;;  %211 = vmatprep.mubr.bf16.mxu0 %v345_v11  ;;  %219 = vmatprep.mubr.bf16.mxu1 %v348_v12  ;;  %v341_v16 = vld [vmem:[%s444_s1 + $0x78] sm:$0xff]   ;;  %v282_v23 = vld [vmem:[%s446_s2] ss:$0 sm:$0xff] }
   0x7   :  { %286 = vmatpush3.bf16.msra.mxu0 %v330_v3  ;;  %320 = vmatpush3.bf16.msra.mxu1 %v330_v3  ;;  %v340_v15 = vld [vmem:[%s444_s1 + $0x30] sm:$0xff]   ;;  %v342_v17 = vld [vmem:[%s444_s1 + $0x38] sm:$0xff]  }
   0x8   :  { %287 = vmatprep.subr.bf16.mxu0 %v331_v4  ;;  %313 = vmatprep.subr.bf16.mxu1 %v331_v4  ;;  %v346_v19 = vld [vmem:[%s445_s0 + $0x10] ss:$8 sps:$4 sm:$0xff]  }
   0xb   :  { %288 = vmatpush3.bf16.msra.mxu0 %v332_v5  ;;  %321 = vmatpush3.bf16.msra.mxu1 %v332_v5 }
   0xc   :  { %289 = vmatprep.subr.bf16.mxu0 %v333_v6  ;;  %314 = vmatprep.subr.bf16.mxu1 %v333_v6 }
   0xf   :  { %290 = vmatpush3.bf16.msra.mxu0 %v334_v7  ;;  %322 = vmatpush3.bf16.msra.mxu1 %v334_v7 }
  0x10   :  { %291 = vmatprep.subr.bf16.mxu0 %v335_v8  ;;  %315 = vmatprep.subr.bf16.mxu1 %v335_v8 }
  0x13   :  { %292 = vmatpush3.bf16.msra.mxu0 %v336_v9  ;;  %323 = vmatpush3.bf16.msra.mxu1 %v336_v9 }
  0x14   :  { %293 = vmatprep.subr.bf16.mxu0 %v337_v10  ;;  %316 = vmatprep.subr.bf16.mxu1 %v337_v10 }
  0x17   :  { %294 = vmatpush3.bf16.msra.mxu0 %v338_v13  ;;  %324 = vmatpush3.bf16.msra.mxu1 %v338_v13 }
  0x18   :  { %295 = vmatprep.subr.bf16.mxu0 %v339_v14  ;;  %317 = vmatprep.subr.bf16.mxu1 %v339_v14 }
  0x1b   :  { %296 = vmatpush3.bf16.msra.mxu0 %v340_v15  ;;  %325 = vmatpush3.bf16.msra.mxu1 %v340_v15 }
  0x1c   :  { %297 = vmatprep.subr.bf16.mxu0 %v341_v16  ;;  %318 = vmatprep.subr.bf16.mxu1 %v341_v16 }
  0x1f   :  { %298 = vmatpush3.bf16.msra.mxu0 %v342_v17  ;;  %326 = vmatpush3.bf16.msra.mxu1 %v342_v17 }
  0x22   :  { %212 = vmatmul.mubr.bf16.vlgmr.msra.gmra.mrb[0].mxu0 %v343_v18  ;;  %220 = vmatmul.mubr.bf16.vlgmr.msra.gmra.mrb[0].mxu1 %v346_v19 }
  0xf5   :  { %v299_v20 = vpop.f32.mrb[0].mxu0  ;;  %v305_v21 = vpop.f32.mrb[0].mxu1 }
  0xf6   :  { %v300_v22 = vpop.f32.mrb[1].mxu0  ;;  %v306_v24 = vpop.f32.mrb[1].mxu1 }
  0xf7   :  { %v301_v25 = vadd.f32 %v300_v22, %v299_v20  ;;  %v307_v26 = vadd.f32 %v306_v24, %v305_v21  ;;  %v302_v27 = vpop.f32.mrb[2].mxu0  ;;  %v308_v28 = vpop.f32.mrb[2].mxu1 }
  0xf8   :  { %v303_v29 = vpop.f32.mrb[3].mxu0  ;;  %v309_v30 = vpop.f32.mrb[3].mxu1 }
  0xf9   :  { %v250_v31 = vadd.f32 %v301_v25, %v282_v23  ;;  %v252_v32 = vadd.f32 %v307_v26, %v282_v23  ;;  %v304_v33 = vadd.f32 %v303_v29, %v302_v27  ;;  %v310_v34 = vadd.f32 %v309_v30, %v308_v28 }
  0xfb   :  { %254 = vst [vmem:[%s447_s3] sm:$0xff] %v250_v31  ;;  %256 = vst [vmem:[%s447_s3 + $0x10] sm:$0xff] %v252_v32  ;;  %v251_v35 = vadd.f32 %v304_v33, %v282_v23  ;;  %v253_v36 = vadd.f32 %v310_v34, %v282_v23 }
  0xfd   :  { %255 = vst [vmem:[%s447_s3 + $0x8] sm:$0xff] %v251_v35  ;;  %257 = vst [vmem:[%s447_s3 + $0x18] sm:$0xff] %v253_v36 }

// kernel: model_forward.45
= control target key start
LH: loop header
LB: loop body
LE: loop exit
PB: predicated region body
PF: predicated region fallthrough
CT: control target
= control target key end

     0   :  { %v328_v1 = vmov 0   ;;  %v229_v19 = vlaneseq  ;;  %s430_s1 = inlined_call_operand.vmem [shape: bf16[128,256], index: 1, kind: input, shape index: {}]   ;;  %s431_s0 = inlined_call_operand.vmem [shape: bf16[32,128], index: 0, kind: input, shape index: {}]   ;;  %s432_s2 = inlined_call_operand.vmem [shape: f32[1,256], index: 2, kind: input, shape index: {}]   ;;  %s433_s3 = inlined_call_operand.vmem [shape: f32[32,256], index: 3, kind: output, shape index: {}]  }
   0x1   :  { %v302_v0 = vld [vmem:[%s430_s1 + $0x4] ss:$8 sps:$4 sm:$0xff]   ;;  %179 = vmatprep.mubr.bf16.mxu0 %v328_v1  ;;  %189 = vmatprep.mubr.bf16.mxu1 %v328_v1  ;;  %v304_v2 = vld [vmem:[%s430_s1] ss:$8 sps:$4 sm:$0xff]   ;;  %v305_v3 = vld [vmem:[%s430_s1 + $0x14] ss:$8 sps:$4 sm:$0xff]  }
   0x2   :  { %147 = vmatprep.subr.bf16.mxu0 %v302_v0  ;;  %285 = vmatprep.subr.bf16.mxu1 %v302_v0  ;;  %v307_v4 = vld [vmem:[%s430_s1 + $0x10] ss:$8 sps:$4 sm:$0xff]   ;;  %v308_v5 = vld [vmem:[%s430_s1 + $0x24] ss:$8 sps:$4 sm:$0xff]   ;;  %v310_v6 = vld [vmem:[%s430_s1 + $0x20] ss:$8 sps:$4 sm:$0xff]  }
   0x3   :  { %148 = vmatpush1.bf16.msra.mxu0 %v304_v2  ;;  %293 = vmatpush1.bf16.msra.mxu1 %v304_v2  ;;  %v311_v7 = vld [vmem:[%s430_s1 + $0x34] ss:$8 sps:$4 sm:$0xff]   ;;  %v313_v8 = vld [vmem:[%s430_s1 + $0x30] ss:$8 sps:$4 sm:$0xff]   ;;  %v314_v9 = vld [vmem:[%s430_s1 + $0x44] ss:$8 sps:$4 sm:$0xff]  }
   0x4   :  { %149 = vmatprep.subr.bf16.mxu0 %v305_v3  ;;  %286 = vmatprep.subr.bf16.mxu1 %v305_v3  ;;  %v316_v10 = vld [vmem:[%s430_s1 + $0x40] ss:$8 sps:$4 sm:$0xff]   ;;  %v317_v11 = vld [vmem:[%s430_s1 + $0x54] ss:$8 sps:$4 sm:$0xff]   ;;  %v319_v12 = vld [vmem:[%s430_s1 + $0x50] ss:$8 sps:$4 sm:$0xff]  }
   0x5   :  { %v320_v13 = vld [vmem:[%s430_s1 + $0x64] ss:$8 sps:$4 sm:$0xff]   ;;  %v322_v14 = vld [vmem:[%s430_s1 + $0x60] ss:$8 sps:$4 sm:$0xff]   ;;  %v323_v15 = vld [vmem:[%s430_s1 + $0x74] ss:$8 sps:$4 sm:$0xff]  }
   0x6   :  { %v325_v16 = vld [vmem:[%s430_s1 + $0x70] ss:$8 sps:$4 sm:$0xff]   ;;  %v326_v17 = vld [vmem:[%s431_s0] sm:$0xff]   ;;  %v327_v18 = vld [vmem:[%s431_s0 + $0x8] sm:$0xff]   ;;  %v230_v20 = vshrl.u32 %v229_v19, 7 }
   0x7   :  { %150 = vmatpush1.bf16.msra.mxu0 %v307_v4  ;;  %294 = vmatpush1.bf16.msra.mxu1 %v307_v4  ;;  %v227_v22 = vld [vmem:[%s432_s2] sm:$0x3] }
   0x8   :  { %151 = vmatprep.subr.bf16.mxu0 %v308_v5  ;;  %287 = vmatprep.subr.bf16.mxu1 %v308_v5  ;;  %v231_v21 = vsub.s32 0, %v230_v20  ;;  %v235_v23 = vsub.s32 1, %v230_v20 }
   0xa   :  { %v232_v24 = vrot.slane %v227_v22, %v231_v21  ;;  %v236_v25 = vrot.slane %v227_v22, %v235_v23 }
   0xb   :  { %152 = vmatpush1.bf16.msra.mxu0 %v310_v6  ;;  %295 = vmatpush1.bf16.msra.mxu1 %v310_v6 }
   0xc   :  { %153 = vmatprep.subr.bf16.mxu0 %v311_v7  ;;  %288 = vmatprep.subr.bf16.mxu1 %v311_v7 }
   0xf   :  { %154 = vmatpush1.bf16.msra.mxu0 %v313_v8  ;;  %296 = vmatpush1.bf16.msra.mxu1 %v313_v8 }
  0x10   :  { %155 = vmatprep.subr.bf16.mxu0 %v314_v9  ;;  %289 = vmatprep.subr.bf16.mxu1 %v314_v9 }
  0x13   :  { %156 = vmatpush1.bf16.msra.mxu0 %v316_v10  ;;  %297 = vmatpush1.bf16.msra.mxu1 %v316_v10 }
  0x14   :  { %157 = vmatprep.subr.bf16.mxu0 %v317_v11  ;;  %290 = vmatprep.subr.bf16.mxu1 %v317_v11 }
  0x17   :  { %158 = vmatpush1.bf16.msra.mxu0 %v319_v12  ;;  %298 = vmatpush1.bf16.msra.mxu1 %v319_v12 }
  0x18   :  { %159 = vmatprep.subr.bf16.mxu0 %v320_v13  ;;  %291 = vmatprep.subr.bf16.mxu1 %v320_v13 }
  0x1b   :  { %160 = vmatpush1.bf16.msra.mxu0 %v322_v14  ;;  %299 = vmatpush1.bf16.msra.mxu1 %v322_v14 }
  0x1c   :  { %161 = vmatprep.subr.bf16.mxu0 %v323_v15  ;;  %292 = vmatprep.subr.bf16.mxu1 %v323_v15 }
  0x1f   :  { %162 = vmatpush1.bf16.msra.mxu0 %v325_v16  ;;  %300 = vmatpush1.bf16.msra.mxu1 %v325_v16 }
  0x22   :  { %180 = vmatmul.mubr.bf16.vlgmr.msra.gmra.mrb[0].mxu0 %v326_v17  ;;  %190 = vmatmul.mubr.bf16.vlgmr.msra.gmra.mrb[0].mxu1 %v327_v18 }
  0xf5   :  { %v181_v26 = vpop.f32.mrb[0].mxu0  ;;  %v191_v27 = vpop.f32.mrb[0].mxu1 }
  0xf6   :  { %v239_v28 = vadd.f32 %v232_v24, %v181_v26  ;;  %v243_v29 = vadd.f32 %v232_v24, %v191_v27  ;;  %v183_v30 = vpop.f32.mrb[1].mxu0  ;;  %v193_v31 = vpop.f32.mrb[1].mxu1 }
  0xf7   :  { %v240_v32 = vadd.f32 %v236_v25, %v183_v30  ;;  %v244_v33 = vadd.f32 %v236_v25, %v193_v31  ;;  %v185_v34 = vpop.f32.mrb[2].mxu0  ;;  %v195_v35 = vpop.f32.mrb[2].mxu1 }
  0xf8   :  { %v247_v36 = vmax.f32 %v239_v28, 0.0  ;;  %v251_v37 = vmax.f32 %v243_v29, 0.0  ;;  %v241_v38 = vadd.f32 %v232_v24, %v185_v34  ;;  %v245_v39 = vadd.f32 %v232_v24, %v195_v35  ;;  %v187_v40 = vpop.f32.mrb[3].mxu0  ;;  %v197_v41 = vpop.f32.mrb[3].mxu1 }
  0xf9   :  { %v248_v42 = vmax.f32 %v240_v32, 0.0  ;;  %v252_v43 = vmax.f32 %v244_v33, 0.0  ;;  %v242_v44 = vadd.f32 %v236_v25, %v187_v40  ;;  %v246_v45 = vadd.f32 %v236_v25, %v197_v41 }
  0xfa   :  { %255 = vst [vmem:[%s433_s3] sm:$0xff] %v247_v36  ;;  %259 = vst [vmem:[%s433_s3 + $0x20] sm:$0xff] %v251_v37  ;;  %v249_v46 = vmax.f32 %v241_v38, 0.0  ;;  %v253_v47 = vmax.f32 %v245_v39, 0.0 }
  0xfb   :  { %256 = vst [vmem:[%s433_s3 + $0x8] sm:$0xff] %v248_v42  ;;  %260 = vst [vmem:[%s433_s3 + $0x28] sm:$0xff] %v252_v43  ;;  %v250_v48 = vmax.f32 %v242_v44, 0.0  ;;  %v254_v49 = vmax.f32 %v246_v45, 0.0 }
  0xfc   :  { %257 = vst [vmem:[%s433_s3 + $0x10] sm:$0xff] %v249_v46  ;;  %261 = vst [vmem:[%s433_s3 + $0x30] sm:$0xff] %v253_v47 }
  0xfd   :  { %258 = vst [vmem:[%s433_s3 + $0x18] sm:$0xff] %v250_v48  ;;  %262 = vst [vmem:[%s433_s3 + $0x38] sm:$0xff] %v254_v49 }

</bundles_post_ra>
